<compile_context>
chip_gen: v7x
topology: tpu7x:2x2x1
jax: 0.10.0
libtpu: 0.0.40
codegen_flags: <defaults>
</compile_context>

<pallas_src>
import jax
import jax.numpy as jnp
from jax import lax
from jax.experimental import pallas as pl
from jax.experimental.pallas import tpu as pltpu

LN_EPS = 1e-5          # PyTorch nn.LayerNorm default
LANE = 128
SUBLANE = 8


def _round_up(x, m):
    return ((x + m - 1) // m) * m


def _silu(x):
    return x * jax.nn.sigmoid(x)


# ----------------------------------------------------------------------------
# Kernel
# ----------------------------------------------------------------------------
def _make_kernel(num_mod, depth, hidden_dim, hp):
    """Fused MultiViewBlock forward for a fixed (num_mod, depth, H, padded H)."""
    inv_h = 1.0 / float(hidden_dim)

    def _ln_masked(x, gamma, beta, mask):
        # LayerNorm over the first `hidden_dim` lanes of an hp-wide padded row.
        # Invariant: padded lanes of x are exactly 0, padded gamma/beta are 0,
        # so the output's padded lanes are 0 as well.
        mu = jnp.sum(x, axis=-1, keepdims=True) * inv_h
        xc = (x - mu) * mask
        var = jnp.sum(xc * xc, axis=-1, keepdims=True) * inv_h
        inv = lax.rsqrt(var + LN_EPS)           # EUP rsqrt (free-ish slot)
        return xc * inv * gamma + beta

    def kernel(x_ref, vec_ref, w_in_ref, w_mat_ref, agg_w_ref, agg_b_ref,
               out_ref):
        if depth > 0:
            mask = (lax.broadcasted_iota(jnp.int32, (1, hp), 1)
                    < hidden_dim).astype(jnp.float32)

        # aggregator accumulator, initialised with the (padded) bias
        acc = jnp.broadcast_to(agg_b_ref[...], out_ref.shape).astype(jnp.float32)

        for m in range(num_mod):
            v = vec_ref[m]                      # (n_vec, hp) packed 1-D params
            x = x_ref[m]                        # (tb, din_p)

            # input2hidden: Linear + SiLU (+ Dropout -> identity at eval)
            h = jnp.dot(x, w_in_ref[m], preferred_element_type=jnp.float32) + v[0:1]
            h = _silu(h)

            for d in range(depth):
                g_a = v[2 + 4 * d:3 + 4 * d]
                b_a = v[3 + 4 * d:4 + 4 * d]
                g_b = v[4 + 4 * d:5 + 4 * d]
                b_b = v[5 + 4 * d:6 + 4 * d]
                # hidden_layers[d]: LN -> Linear(no bias) -> SiLU -> Linear(no bias)
                r = _ln_masked(h, g_a, b_a, mask)
                r = _silu(jnp.dot(r, w_mat_ref[m, 2 * d],
                                  preferred_element_type=jnp.float32))
                r = jnp.dot(r, w_mat_ref[m, 2 * d + 1],
                            preferred_element_type=jnp.float32)
                # residual + layer_norms[d]
                h = _ln_masked(h + r, g_b, b_b, mask)

            # hidden2output (last slot of the weight slab)
            h = jnp.dot(h, w_mat_ref[m, 2 * depth],
                        preferred_element_type=jnp.float32) + v[1:2]

            # aggregator: accumulate per-modality chunk instead of lane concat
            acc = acc + jnp.dot(h, agg_w_ref[m], preferred_element_type=jnp.float32)

        out_ref[...] = acc.astype(out_ref.dtype)

    return kernel


# ----------------------------------------------------------------------------
# Host-side parameter packing (done once, outside the hot path)
# ----------------------------------------------------------------------------
def pack_params(params, input_dim_list):
    num_mod = len(input_dim_list)
    depth = params["depth"]
    H = params["hidden_dim"]
    L = params["latent_dim"]

    hp = _round_up(H, LANE)
    lp = _round_up(L, LANE)
    dp = _round_up(max(input_dim_list), LANE)
    n_vec = 2 + 4 * depth

    vec = jnp.zeros((num_mod, n_vec, hp), jnp.float32)
    w_in = jnp.zeros((num_mod, dp, hp), jnp.float32)
    # slots [0 .. 2*depth-1] = hidden-layer w1/w2, slot [2*depth] = w_out
    w_mat = jnp.zeros((num_mod, 2 * depth + 1, hp, hp), jnp.float32)
    agg_w = jnp.zeros((num_mod, hp, lp), jnp.float32)

    for m in range(num_mod):
        p = params["encoders"][m]
        d_in = p["w_in"].shape[0]
        vec = vec.at[m, 0, :H].set(p["b_in"].reshape(-1))
        vec = vec.at[m, 1, :H].set(p["b_out"].reshape(-1))
        w_in = w_in.at[m, :d_in, :H].set(p["w_in"])
        w_mat = w_mat.at[m, 2 * depth, :H, :H].set(p["w_out"])
        for d in range(depth):
            lyr = p["layers"][d]
            vec = vec.at[m, 2 + 4 * d, :H].set(lyr["ln_a_g"].reshape(-1))
            vec = vec.at[m, 3 + 4 * d, :H].set(lyr["ln_a_b"].reshape(-1))
            vec = vec.at[m, 4 + 4 * d, :H].set(lyr["ln_b_g"].reshape(-1))
            vec = vec.at[m, 5 + 4 * d, :H].set(lyr["ln_b_b"].reshape(-1))
            w_mat = w_mat.at[m, 2 * d, :H, :H].set(lyr["w1"])
            w_mat = w_mat.at[m, 2 * d + 1, :H, :H].set(lyr["w2"])
        # per-modality chunk of the aggregator weight (replaces concat)
        agg_w = agg_w.at[m, :H, :L].set(params["agg_w"][m * H:(m + 1) * H, :])

    agg_b = jnp.zeros((1, lp), jnp.float32).at[0, :L].set(
        params["agg_b"].reshape(-1))

    return {
        "num_mod": num_mod, "depth": depth, "H": H, "L": L,
        "hp": hp, "lp": lp, "dp": dp, "n_vec": n_vec,
        "vec": vec, "w_in": w_in, "w_mat": w_mat,
        "agg_w": agg_w, "agg_b": agg_b,
    }


# ----------------------------------------------------------------------------
# Forward
# ----------------------------------------------------------------------------
def multiview_forward(x_list, packed):
    num_mod = packed["num_mod"]
    depth = packed["depth"]
    H, L = packed["H"], packed["L"]
    hp, lp, dp, n_vec = packed["hp"], packed["lp"], packed["dp"], packed["n_vec"]

    B = x_list[0].shape[0]
    tb = min(_round_up(B, SUBLANE), 256)      # batch tile (multiple of 8, f32)
    bp = _round_up(B, tb)
    grid = (bp // tb,)

    # pack + pad activations into a single (num_mod, bp, dp) slab
    x_slab = jnp.zeros((num_mod, bp, dp), jnp.float32)
    for m, x in enumerate(x_list):
        x_slab = x_slab.at[m, :B, :x.shape[1]].set(x.astype(jnp.float32))

    const = lambda *block_idx: (lambda i: block_idx)   # weight-resident blocks

    in_specs = [
        pl.BlockSpec((num_mod, tb, dp), lambda i: (0, i, 0)),       # x (tiled)
        pl.BlockSpec((num_mod, n_vec, hp), const(0, 0, 0)),         # packed vectors
        pl.BlockSpec((num_mod, dp, hp), const(0, 0, 0)),            # w_in
        pl.BlockSpec((num_mod, 2 * depth + 1, hp, hp),
                     const(0, 0, 0, 0)),                            # w1/w2/w_out slab
        pl.BlockSpec((num_mod, hp, lp), const(0, 0, 0)),            # agg_w chunks
        pl.BlockSpec((1, lp), const(0, 0)),                         # agg_b
    ]
    inputs = [x_slab, packed["vec"], packed["w_in"], packed["w_mat"],
              packed["agg_w"], packed["agg_b"]]

    out_specs = pl.BlockSpec((tb, lp), lambda i: (i, 0))            # lane-dense out

    kernel = _make_kernel(num_mod, depth, H, hp)
    out = pl.pallas_call(
        kernel,
        out_shape=jax.ShapeDtypeStruct((bp, lp), jnp.float32),
        grid=grid,
        in_specs=in_specs,
        out_specs=out_specs,
        compiler_params=pltpu.CompilerParams(
            dimension_semantics=("parallel",),     # lets v7x split batch over 2 TCs
            vmem_limit_bytes=32 * 1024 * 1024,     # explicit budget (safe on v5e/v6e/v7x)
        ),
    )(*inputs)

    return out[:B, :L]


# ----------------------------------------------------------------------------
# Synthetic params + pure-JAX reference
# ----------------------------------------------------------------------------
def init_params(key, input_dim_list, hidden_dim, latent_dim, depth):
    def lin(k, fan_in, fan_out):
        bound = 1.0 / jnp.sqrt(fan_in)
        return jax.random.uniform(k, (fan_in, fan_out), jnp.float32, -bound, bound)

    params = {"depth": depth, "hidden_dim": hidden_dim,
              "latent_dim": latent_dim, "encoders": []}
    keys = jax.random.split(key, len(input_dim_list) + 1)
    for m, d_in in enumerate(input_dim_list):
        ek = jax.random.split(keys[m], 4 + 2 * max(depth, 1))
        enc = {
            "w_in": lin(ek[0], d_in, hidden_dim),
            "b_in": jax.random.uniform(ek[1], (1, hidden_dim), jnp.float32,
                                       -1.0 / jnp.sqrt(d_in), 1.0 / jnp.sqrt(d_in)),
            "layers": [],
            "w_out": lin(ek[2], hidden_dim, hidden_dim),
            "b_out": jax.random.uniform(ek[3], (1, hidden_dim), jnp.float32,
                                        -1.0 / jnp.sqrt(hidden_dim),
                                        1.0 / jnp.sqrt(hidden_dim)),
        }
        for d in range(depth):
            lk = jax.random.split(ek[4 + 2 * d], 2)
            enc["layers"].append({
                "ln_a_g": jnp.ones((1, hidden_dim), jnp.float32),
                "ln_a_b": jnp.zeros((1, hidden_dim), jnp.float32),
                "w1": lin(lk[0], hidden_dim, hidden_dim),
                "w2": lin(lk[1], hidden_dim, hidden_dim),
                "ln_b_g": jnp.ones((1, hidden_dim), jnp.float32),
                "ln_b_b": jnp.zeros((1, hidden_dim), jnp.float32),
            })
        params["encoders"].append(enc)

    ak = jax.random.split(keys[-1], 2)
    fan_in = len(input_dim_list) * hidden_dim
    params["agg_w"] = lin(ak[0], fan_in, latent_dim)
    params["agg_b"] = jax.random.uniform(ak[1], (1, latent_dim), jnp.float32,
                                         -1.0 / jnp.sqrt(fan_in),
                                         1.0 / jnp.sqrt(fan_in))
    return params


def _layernorm_ref(x, gamma, beta):
    mu = jnp.mean(x, axis=-1, keepdims=True)
    xc = x - mu
    var = jnp.mean(xc * xc, axis=-1, keepdims=True)
    return xc * lax.rsqrt(var + LN_EPS) * gamma + beta


def reference_forward(x_list, params):
    outs = []
    for m, x in enumerate(x_list):
        p = params["encoders"][m]
        h = _silu(x @ p["w_in"] + p["b_in"])
        for lyr in p["layers"]:
            r = _layernorm_ref(h, lyr["ln_a_g"], lyr["ln_a_b"])
            r = _silu(r @ lyr["w1"]) @ lyr["w2"]
            h = _layernorm_ref(h + r, lyr["ln_b_g"], lyr["ln_b_b"])
        outs.append(h @ p["w_out"] + p["b_out"])
    cat = jnp.concatenate(outs, axis=-1)
    return cat @ params["agg_w"] + params["agg_b"]


# ----------------------------------------------------------------------------
if __name__ == "__main__":
    key = jax.random.PRNGKey(0)
    k_param, k_x1, k_x2 = jax.random.split(key, 3)

    batch = 8
    input_dim_list = [16, 32]
    hidden_dim = 32
    latent_dim = 16
    depth = 1

    params = init_params(k_param, input_dim_list, hidden_dim, latent_dim, depth)
    x_list = [
        jax.random.normal(k_x1, (batch, input_dim_list[0]), jnp.float32),
        jax.random.normal(k_x2, (batch, input_dim_list[1]), jnp.float32),
    ]

    packed = pack_params(params, input_dim_list)
    out = multiview_forward(x_list, packed)
    out = jax.block_until_ready(out)

    ref = reference_forward(x_list, params)
    assert out.shape == (batch, latent_dim)
    assert jnp.allclose(out, ref, atol=1e-4, rtol=1e-4), "mismatch vs reference"

    print("KERNEL_OK")
</pallas_src>

<mosaic_0001>
module attributes {stable_mosaic.version = 11 : i64} {
  func.func @kernel(%arg0: i32, %arg1: memref<2x8x128xf32, #tpu.memory_space<vmem>>, %arg2: memref<2x6x128xf32, #tpu.memory_space<vmem>>, %arg3: memref<2x128x128xf32, #tpu.memory_space<vmem>>, %arg4: memref<2x3x128x128xf32, #tpu.memory_space<vmem>>, %arg5: memref<2x128x128xf32, #tpu.memory_space<vmem>>, %arg6: memref<1x128xf32, #tpu.memory_space<vmem>>, %arg7: memref<8x128xf32, #tpu.memory_space<vmem>>) attributes {dimension_semantics = [#tpu.dimension_semantics<parallel>], iteration_bounds = array<i64: 1>, scalar_prefetch = 0 : i64, scratch_operands = 0 : i64, tpu.core_type = #tpu.core_type<tc>, window_params = [{transform_indices = @transform_0, window_bounds = array<i64: 2, 8, 128>}, {pipeline_mode = #tpu.pipeline_mode<synchronous>, transform_indices = @transform_1, window_bounds = array<i64: 2, 6, 128>}, {pipeline_mode = #tpu.pipeline_mode<synchronous>, transform_indices = @transform_2, window_bounds = array<i64: 2, 128, 128>}, {pipeline_mode = #tpu.pipeline_mode<synchronous>, transform_indices = @transform_3, window_bounds = array<i64: 2, 3, 128, 128>}, {pipeline_mode = #tpu.pipeline_mode<synchronous>, transform_indices = @transform_4, window_bounds = array<i64: 2, 128, 128>}, {pipeline_mode = #tpu.pipeline_mode<synchronous>, transform_indices = @transform_5, window_bounds = array<i64: 1, 128>}, {transform_indices = @transform_6, window_bounds = array<i64: 8, 128>}]} {
    %0 = tpu.iota {dimensions = array<i32: 1>} : vector<1x128xi32>
    %c32_i32 = arith.constant 32 : i32
    %1 = vector.broadcast %c32_i32 : i32 to vector<1x128xi32>
    %2 = arith.cmpi slt, %0, %1 : vector<1x128xi32>
    %3 = arith.extui %2 : vector<1x128xi1> to vector<1x128xi32>
    %4 = arith.sitofp %3 : vector<1x128xi32> to vector<1x128xf32>
    %c0 = arith.constant 0 : index
    %c0_0 = arith.constant 0 : index
    %5 = vector.load %arg6[%c0, %c0_0] : memref<1x128xf32, #tpu.memory_space<vmem>>, vector<1x128xf32>
    %6 = vector.shape_cast %5 : vector<1x128xf32> to vector<1x128xf32>
    %7 = vector.broadcast %6 : vector<1x128xf32> to vector<8x128xf32>
    %c0_1 = arith.constant 0 : index
    %c0_2 = arith.constant 0 : index
    %c0_3 = arith.constant 0 : index
    %8 = vector.load %arg2[%c0_1, %c0_2, %c0_3] : memref<2x6x128xf32, #tpu.memory_space<vmem>>, vector<1x6x128xf32>
    %9 = vector.shape_cast %8 : vector<1x6x128xf32> to vector<6x128xf32>
    %c0_4 = arith.constant 0 : index
    %c0_5 = arith.constant 0 : index
    %c0_6 = arith.constant 0 : index
    %10 = vector.load %arg1[%c0_4, %c0_5, %c0_6] : memref<2x8x128xf32, #tpu.memory_space<vmem>>, vector<1x8x128xf32>
    %11 = vector.shape_cast %10 : vector<1x8x128xf32> to vector<8x128xf32>
    %c0_7 = arith.constant 0 : index
    %c0_8 = arith.constant 0 : index
    %c0_9 = arith.constant 0 : index
    %12 = vector.load %arg3[%c0_7, %c0_8, %c0_9] : memref<2x128x128xf32, #tpu.memory_space<vmem>>, vector<1x128x128xf32>
    %13 = vector.shape_cast %12 : vector<1x128x128xf32> to vector<128x128xf32>
    %cst = arith.constant dense<0.000000e+00> : vector<8x128xf32>
    %14 = tpu.matmul %11, %13, %cst {dimension_numbers = #tpu.dot_dimension_numbers<[1], [0], [0], [1], [0, 0, 1, 1], [], []>} : vector<8x128xf32>, vector<128x128xf32>, vector<8x128xf32> -> vector<8x128xf32>
    %15 = vector.extract_strided_slice %9 {offsets = [0, 0], sizes = [1, 128], strides = [1, 1]} : vector<6x128xf32> to vector<1x128xf32>
    %16 = vector.broadcast %15 : vector<1x128xf32> to vector<8x128xf32>
    %17 = arith.addf %14, %16 : vector<8x128xf32>
    %18 = arith.negf %17 : vector<8x128xf32>
    %19 = math.exp %18 : vector<8x128xf32>
    %cst_10 = arith.constant 1.000000e+00 : f32
    %20 = vector.broadcast %cst_10 : f32 to vector<8x128xf32>
    %21 = arith.addf %20, %19 : vector<8x128xf32>
    %22 = arith.divf %20, %21 : vector<8x128xf32>
    %23 = arith.mulf %17, %22 : vector<8x128xf32>
    %24 = vector.extract_strided_slice %9 {offsets = [2, 0], sizes = [1, 128], strides = [1, 1]} : vector<6x128xf32> to vector<1x128xf32>
    %25 = vector.extract_strided_slice %9 {offsets = [3, 0], sizes = [1, 128], strides = [1, 1]} : vector<6x128xf32> to vector<1x128xf32>
    %26 = vector.extract_strided_slice %9 {offsets = [4, 0], sizes = [1, 128], strides = [1, 1]} : vector<6x128xf32> to vector<1x128xf32>
    %27 = vector.extract_strided_slice %9 {offsets = [5, 0], sizes = [1, 128], strides = [1, 1]} : vector<6x128xf32> to vector<1x128xf32>
    %cst_11 = arith.constant dense<0.000000e+00> : vector<8xf32>
    %28 = vector.multi_reduction <add>, %23, %cst_11 [1] : vector<8x128xf32> to vector<8xf32>
    %29 = vector.shape_cast %28 : vector<8xf32> to vector<8x1xf32>
    %cst_12 = arith.constant 3.125000e-02 : f32
    %30 = vector.broadcast %cst_12 : f32 to vector<8x1xf32>
    %31 = arith.mulf %29, %30 : vector<8x1xf32>
    %32 = vector.broadcast %31 : vector<8x1xf32> to vector<8x128xf32>
    %33 = arith.subf %23, %32 : vector<8x128xf32>
    %34 = vector.broadcast %4 : vector<1x128xf32> to vector<8x128xf32>
    %35 = arith.mulf %33, %34 : vector<8x128xf32>
    %36 = arith.mulf %35, %35 : vector<8x128xf32>
    %cst_13 = arith.constant dense<0.000000e+00> : vector<8xf32>
    %37 = vector.multi_reduction <add>, %36, %cst_13 [1] : vector<8x128xf32> to vector<8xf32>
    %38 = vector.shape_cast %37 : vector<8xf32> to vector<8x1xf32>
    %cst_14 = arith.constant 3.125000e-02 : f32
    %39 = vector.broadcast %cst_14 : f32 to vector<8x1xf32>
    %40 = arith.mulf %38, %39 : vector<8x1xf32>
    %cst_15 = arith.constant 9.99999974E-6 : f32
    %41 = vector.broadcast %cst_15 : f32 to vector<8x1xf32>
    %42 = arith.addf %40, %41 : vector<8x1xf32>
    %43 = math.rsqrt %42 : vector<8x1xf32>
    %44 = vector.broadcast %43 : vector<8x1xf32> to vector<8x128xf32>
    %45 = arith.mulf %35, %44 : vector<8x128xf32>
    %46 = vector.broadcast %24 : vector<1x128xf32> to vector<8x128xf32>
    %47 = arith.mulf %45, %46 : vector<8x128xf32>
    %48 = vector.broadcast %25 : vector<1x128xf32> to vector<8x128xf32>
    %49 = arith.addf %47, %48 : vector<8x128xf32>
    %c0_16 = arith.constant 0 : index
    %c0_17 = arith.constant 0 : index
    %c0_18 = arith.constant 0 : index
    %c0_19 = arith.constant 0 : index
    %50 = vector.load %arg4[%c0_16, %c0_17, %c0_18, %c0_19] : memref<2x3x128x128xf32, #tpu.memory_space<vmem>>, vector<1x1x128x128xf32>
    %51 = vector.shape_cast %50 : vector<1x1x128x128xf32> to vector<128x128xf32>
    %cst_20 = arith.constant dense<0.000000e+00> : vector<8x128xf32>
    %52 = tpu.matmul %49, %51, %cst_20 {dimension_numbers = #tpu.dot_dimension_numbers<[1], [0], [0], [1], [0, 0, 1, 1], [], []>} : vector<8x128xf32>, vector<128x128xf32>, vector<8x128xf32> -> vector<8x128xf32>
    %53 = arith.negf %52 : vector<8x128xf32>
    %54 = math.exp %53 : vector<8x128xf32>
    %cst_21 = arith.constant 1.000000e+00 : f32
    %55 = vector.broadcast %cst_21 : f32 to vector<8x128xf32>
    %56 = arith.addf %55, %54 : vector<8x128xf32>
    %57 = arith.divf %55, %56 : vector<8x128xf32>
    %58 = arith.mulf %52, %57 : vector<8x128xf32>
    %c0_22 = arith.constant 0 : index
    %c1 = arith.constant 1 : index
    %c0_23 = arith.constant 0 : index
    %c0_24 = arith.constant 0 : index
    %59 = vector.load %arg4[%c0_22, %c1, %c0_23, %c0_24] : memref<2x3x128x128xf32, #tpu.memory_space<vmem>>, vector<1x1x128x128xf32>
    %60 = vector.shape_cast %59 : vector<1x1x128x128xf32> to vector<128x128xf32>
    %cst_25 = arith.constant dense<0.000000e+00> : vector<8x128xf32>
    %61 = tpu.matmul %58, %60, %cst_25 {dimension_numbers = #tpu.dot_dimension_numbers<[1], [0], [0], [1], [0, 0, 1, 1], [], []>} : vector<8x128xf32>, vector<128x128xf32>, vector<8x128xf32> -> vector<8x128xf32>
    %62 = arith.addf %23, %61 : vector<8x128xf32>
    %cst_26 = arith.constant dense<0.000000e+00> : vector<8xf32>
    %63 = vector.multi_reduction <add>, %62, %cst_26 [1] : vector<8x128xf32> to vector<8xf32>
    %64 = vector.shape_cast %63 : vector<8xf32> to vector<8x1xf32>
    %cst_27 = arith.constant 3.125000e-02 : f32
    %65 = vector.broadcast %cst_27 : f32 to vector<8x1xf32>
    %66 = arith.mulf %64, %65 : vector<8x1xf32>
    %67 = vector.broadcast %66 : vector<8x1xf32> to vector<8x128xf32>
    %68 = arith.subf %62, %67 : vector<8x128xf32>
    %69 = vector.broadcast %4 : vector<1x128xf32> to vector<8x128xf32>
    %70 = arith.mulf %68, %69 : vector<8x128xf32>
    %71 = arith.mulf %70, %70 : vector<8x128xf32>
    %cst_28 = arith.constant dense<0.000000e+00> : vector<8xf32>
    %72 = vector.multi_reduction <add>, %71, %cst_28 [1] : vector<8x128xf32> to vector<8xf32>
    %73 = vector.shape_cast %72 : vector<8xf32> to vector<8x1xf32>
    %cst_29 = arith.constant 3.125000e-02 : f32
    %74 = vector.broadcast %cst_29 : f32 to vector<8x1xf32>
    %75 = arith.mulf %73, %74 : vector<8x1xf32>
    %cst_30 = arith.constant 9.99999974E-6 : f32
    %76 = vector.broadcast %cst_30 : f32 to vector<8x1xf32>
    %77 = arith.addf %75, %76 : vector<8x1xf32>
    %78 = math.rsqrt %77 : vector<8x1xf32>
    %79 = vector.broadcast %78 : vector<8x1xf32> to vector<8x128xf32>
    %80 = arith.mulf %70, %79 : vector<8x128xf32>
    %81 = vector.broadcast %26 : vector<1x128xf32> to vector<8x128xf32>
    %82 = arith.mulf %80, %81 : vector<8x128xf32>
    %83 = vector.broadcast %27 : vector<1x128xf32> to vector<8x128xf32>
    %84 = arith.addf %82, %83 : vector<8x128xf32>
    %c0_31 = arith.constant 0 : index
    %c2 = arith.constant 2 : index
    %c0_32 = arith.constant 0 : index
    %c0_33 = arith.constant 0 : index
    %85 = vector.load %arg4[%c0_31, %c2, %c0_32, %c0_33] : memref<2x3x128x128xf32, #tpu.memory_space<vmem>>, vector<1x1x128x128xf32>
    %86 = vector.shape_cast %85 : vector<1x1x128x128xf32> to vector<128x128xf32>
    %cst_34 = arith.constant dense<0.000000e+00> : vector<8x128xf32>
    %87 = tpu.matmul %84, %86, %cst_34 {dimension_numbers = #tpu.dot_dimension_numbers<[1], [0], [0], [1], [0, 0, 1, 1], [], []>} : vector<8x128xf32>, vector<128x128xf32>, vector<8x128xf32> -> vector<8x128xf32>
    %88 = vector.extract_strided_slice %9 {offsets = [1, 0], sizes = [1, 128], strides = [1, 1]} : vector<6x128xf32> to vector<1x128xf32>
    %89 = vector.broadcast %88 : vector<1x128xf32> to vector<8x128xf32>
    %90 = arith.addf %87, %89 : vector<8x128xf32>
    %c0_35 = arith.constant 0 : index
    %c0_36 = arith.constant 0 : index
    %c0_37 = arith.constant 0 : index
    %91 = vector.load %arg5[%c0_35, %c0_36, %c0_37] : memref<2x128x128xf32, #tpu.memory_space<vmem>>, vector<1x128x128xf32>
    %92 = vector.shape_cast %91 : vector<1x128x128xf32> to vector<128x128xf32>
    %cst_38 = arith.constant dense<0.000000e+00> : vector<8x128xf32>
    %93 = tpu.matmul %90, %92, %cst_38 {dimension_numbers = #tpu.dot_dimension_numbers<[1], [0], [0], [1], [0, 0, 1, 1], [], []>} : vector<8x128xf32>, vector<128x128xf32>, vector<8x128xf32> -> vector<8x128xf32>
    %94 = arith.addf %7, %93 : vector<8x128xf32>
    %c1_39 = arith.constant 1 : index
    %c0_40 = arith.constant 0 : index
    %c0_41 = arith.constant 0 : index
    %95 = vector.load %arg2[%c1_39, %c0_40, %c0_41] : memref<2x6x128xf32, #tpu.memory_space<vmem>>, vector<1x6x128xf32>
    %96 = vector.shape_cast %95 : vector<1x6x128xf32> to vector<6x128xf32>
    %c1_42 = arith.constant 1 : index
    %c0_43 = arith.constant 0 : index
    %c0_44 = arith.constant 0 : index
    %97 = vector.load %arg1[%c1_42, %c0_43, %c0_44] : memref<2x8x128xf32, #tpu.memory_space<vmem>>, vector<1x8x128xf32>
    %98 = vector.shape_cast %97 : vector<1x8x128xf32> to vector<8x128xf32>
    %c1_45 = arith.constant 1 : index
    %c0_46 = arith.constant 0 : index
    %c0_47 = arith.constant 0 : index
    %99 = vector.load %arg3[%c1_45, %c0_46, %c0_47] : memref<2x128x128xf32, #tpu.memory_space<vmem>>, vector<1x128x128xf32>
    %100 = vector.shape_cast %99 : vector<1x128x128xf32> to vector<128x128xf32>
    %cst_48 = arith.constant dense<0.000000e+00> : vector<8x128xf32>
    %101 = tpu.matmul %98, %100, %cst_48 {dimension_numbers = #tpu.dot_dimension_numbers<[1], [0], [0], [1], [0, 0, 1, 1], [], []>} : vector<8x128xf32>, vector<128x128xf32>, vector<8x128xf32> -> vector<8x128xf32>
    %102 = vector.extract_strided_slice %96 {offsets = [0, 0], sizes = [1, 128], strides = [1, 1]} : vector<6x128xf32> to vector<1x128xf32>
    %103 = vector.broadcast %102 : vector<1x128xf32> to vector<8x128xf32>
    %104 = arith.addf %101, %103 : vector<8x128xf32>
    %105 = arith.negf %104 : vector<8x128xf32>
    %106 = math.exp %105 : vector<8x128xf32>
    %cst_49 = arith.constant 1.000000e+00 : f32
    %107 = vector.broadcast %cst_49 : f32 to vector<8x128xf32>
    %108 = arith.addf %107, %106 : vector<8x128xf32>
    %109 = arith.divf %107, %108 : vector<8x128xf32>
    %110 = arith.mulf %104, %109 : vector<8x128xf32>
    %111 = vector.extract_strided_slice %96 {offsets = [2, 0], sizes = [1, 128], strides = [1, 1]} : vector<6x128xf32> to vector<1x128xf32>
    %112 = vector.extract_strided_slice %96 {offsets = [3, 0], sizes = [1, 128], strides = [1, 1]} : vector<6x128xf32> to vector<1x128xf32>
    %113 = vector.extract_strided_slice %96 {offsets = [4, 0], sizes = [1, 128], strides = [1, 1]} : vector<6x128xf32> to vector<1x128xf32>
    %114 = vector.extract_strided_slice %96 {offsets = [5, 0], sizes = [1, 128], strides = [1, 1]} : vector<6x128xf32> to vector<1x128xf32>
    %cst_50 = arith.constant dense<0.000000e+00> : vector<8xf32>
    %115 = vector.multi_reduction <add>, %110, %cst_50 [1] : vector<8x128xf32> to vector<8xf32>
    %116 = vector.shape_cast %115 : vector<8xf32> to vector<8x1xf32>
    %cst_51 = arith.constant 3.125000e-02 : f32
    %117 = vector.broadcast %cst_51 : f32 to vector<8x1xf32>
    %118 = arith.mulf %116, %117 : vector<8x1xf32>
    %119 = vector.broadcast %118 : vector<8x1xf32> to vector<8x128xf32>
    %120 = arith.subf %110, %119 : vector<8x128xf32>
    %121 = vector.broadcast %4 : vector<1x128xf32> to vector<8x128xf32>
    %122 = arith.mulf %120, %121 : vector<8x128xf32>
    %123 = arith.mulf %122, %122 : vector<8x128xf32>
    %cst_52 = arith.constant dense<0.000000e+00> : vector<8xf32>
    %124 = vector.multi_reduction <add>, %123, %cst_52 [1] : vector<8x128xf32> to vector<8xf32>
    %125 = vector.shape_cast %124 : vector<8xf32> to vector<8x1xf32>
    %cst_53 = arith.constant 3.125000e-02 : f32
    %126 = vector.broadcast %cst_53 : f32 to vector<8x1xf32>
    %127 = arith.mulf %125, %126 : vector<8x1xf32>
    %cst_54 = arith.constant 9.99999974E-6 : f32
    %128 = vector.broadcast %cst_54 : f32 to vector<8x1xf32>
    %129 = arith.addf %127, %128 : vector<8x1xf32>
    %130 = math.rsqrt %129 : vector<8x1xf32>
    %131 = vector.broadcast %130 : vector<8x1xf32> to vector<8x128xf32>
    %132 = arith.mulf %122, %131 : vector<8x128xf32>
    %133 = vector.broadcast %111 : vector<1x128xf32> to vector<8x128xf32>
    %134 = arith.mulf %132, %133 : vector<8x128xf32>
    %135 = vector.broadcast %112 : vector<1x128xf32> to vector<8x128xf32>
    %136 = arith.addf %134, %135 : vector<8x128xf32>
    %c1_55 = arith.constant 1 : index
    %c0_56 = arith.constant 0 : index
    %c0_57 = arith.constant 0 : index
    %c0_58 = arith.constant 0 : index
    %137 = vector.load %arg4[%c1_55, %c0_56, %c0_57, %c0_58] : memref<2x3x128x128xf32, #tpu.memory_space<vmem>>, vector<1x1x128x128xf32>
    %138 = vector.shape_cast %137 : vector<1x1x128x128xf32> to vector<128x128xf32>
    %cst_59 = arith.constant dense<0.000000e+00> : vector<8x128xf32>
    %139 = tpu.matmul %136, %138, %cst_59 {dimension_numbers = #tpu.dot_dimension_numbers<[1], [0], [0], [1], [0, 0, 1, 1], [], []>} : vector<8x128xf32>, vector<128x128xf32>, vector<8x128xf32> -> vector<8x128xf32>
    %140 = arith.negf %139 : vector<8x128xf32>
    %141 = math.exp %140 : vector<8x128xf32>
    %cst_60 = arith.constant 1.000000e+00 : f32
    %142 = vector.broadcast %cst_60 : f32 to vector<8x128xf32>
    %143 = arith.addf %142, %141 : vector<8x128xf32>
    %144 = arith.divf %142, %143 : vector<8x128xf32>
    %145 = arith.mulf %139, %144 : vector<8x128xf32>
    %c1_61 = arith.constant 1 : index
    %c1_62 = arith.constant 1 : index
    %c0_63 = arith.constant 0 : index
    %c0_64 = arith.constant 0 : index
    %146 = vector.load %arg4[%c1_61, %c1_62, %c0_63, %c0_64] : memref<2x3x128x128xf32, #tpu.memory_space<vmem>>, vector<1x1x128x128xf32>
    %147 = vector.shape_cast %146 : vector<1x1x128x128xf32> to vector<128x128xf32>
    %cst_65 = arith.constant dense<0.000000e+00> : vector<8x128xf32>
    %148 = tpu.matmul %145, %147, %cst_65 {dimension_numbers = #tpu.dot_dimension_numbers<[1], [0], [0], [1], [0, 0, 1, 1], [], []>} : vector<8x128xf32>, vector<128x128xf32>, vector<8x128xf32> -> vector<8x128xf32>
    %149 = arith.addf %110, %148 : vector<8x128xf32>
    %cst_66 = arith.constant dense<0.000000e+00> : vector<8xf32>
    %150 = vector.multi_reduction <add>, %149, %cst_66 [1] : vector<8x128xf32> to vector<8xf32>
    %151 = vector.shape_cast %150 : vector<8xf32> to vector<8x1xf32>
    %cst_67 = arith.constant 3.125000e-02 : f32
    %152 = vector.broadcast %cst_67 : f32 to vector<8x1xf32>
    %153 = arith.mulf %151, %152 : vector<8x1xf32>
    %154 = vector.broadcast %153 : vector<8x1xf32> to vector<8x128xf32>
    %155 = arith.subf %149, %154 : vector<8x128xf32>
    %156 = vector.broadcast %4 : vector<1x128xf32> to vector<8x128xf32>
    %157 = arith.mulf %155, %156 : vector<8x128xf32>
    %158 = arith.mulf %157, %157 : vector<8x128xf32>
    %cst_68 = arith.constant dense<0.000000e+00> : vector<8xf32>
    %159 = vector.multi_reduction <add>, %158, %cst_68 [1] : vector<8x128xf32> to vector<8xf32>
    %160 = vector.shape_cast %159 : vector<8xf32> to vector<8x1xf32>
    %cst_69 = arith.constant 3.125000e-02 : f32
    %161 = vector.broadcast %cst_69 : f32 to vector<8x1xf32>
    %162 = arith.mulf %160, %161 : vector<8x1xf32>
    %cst_70 = arith.constant 9.99999974E-6 : f32
    %163 = vector.broadcast %cst_70 : f32 to vector<8x1xf32>
    %164 = arith.addf %162, %163 : vector<8x1xf32>
    %165 = math.rsqrt %164 : vector<8x1xf32>
    %166 = vector.broadcast %165 : vector<8x1xf32> to vector<8x128xf32>
    %167 = arith.mulf %157, %166 : vector<8x128xf32>
    %168 = vector.broadcast %113 : vector<1x128xf32> to vector<8x128xf32>
    %169 = arith.mulf %167, %168 : vector<8x128xf32>
    %170 = vector.broadcast %114 : vector<1x128xf32> to vector<8x128xf32>
    %171 = arith.addf %169, %170 : vector<8x128xf32>
    %c1_71 = arith.constant 1 : index
    %c2_72 = arith.constant 2 : index
    %c0_73 = arith.constant 0 : index
    %c0_74 = arith.constant 0 : index
    %172 = vector.load %arg4[%c1_71, %c2_72, %c0_73, %c0_74] : memref<2x3x128x128xf32, #tpu.memory_space<vmem>>, vector<1x1x128x128xf32>
    %173 = vector.shape_cast %172 : vector<1x1x128x128xf32> to vector<128x128xf32>
    %cst_75 = arith.constant dense<0.000000e+00> : vector<8x128xf32>
    %174 = tpu.matmul %171, %173, %cst_75 {dimension_numbers = #tpu.dot_dimension_numbers<[1], [0], [0], [1], [0, 0, 1, 1], [], []>} : vector<8x128xf32>, vector<128x128xf32>, vector<8x128xf32> -> vector<8x128xf32>
    %175 = vector.extract_strided_slice %96 {offsets = [1, 0], sizes = [1, 128], strides = [1, 1]} : vector<6x128xf32> to vector<1x128xf32>
    %176 = vector.broadcast %175 : vector<1x128xf32> to vector<8x128xf32>
    %177 = arith.addf %174, %176 : vector<8x128xf32>
    %c1_76 = arith.constant 1 : index
    %c0_77 = arith.constant 0 : index
    %c0_78 = arith.constant 0 : index
    %178 = vector.load %arg5[%c1_76, %c0_77, %c0_78] : memref<2x128x128xf32, #tpu.memory_space<vmem>>, vector<1x128x128xf32>
    %179 = vector.shape_cast %178 : vector<1x128x128xf32> to vector<128x128xf32>
    %cst_79 = arith.constant dense<0.000000e+00> : vector<8x128xf32>
    %180 = tpu.matmul %177, %179, %cst_79 {dimension_numbers = #tpu.dot_dimension_numbers<[1], [0], [0], [1], [0, 0, 1, 1], [], []>} : vector<8x128xf32>, vector<128x128xf32>, vector<8x128xf32> -> vector<8x128xf32>
    %181 = arith.addf %94, %180 : vector<8x128xf32>
    %c0_80 = arith.constant 0 : index
    %c0_81 = arith.constant 0 : index
    %182 = vector.load %arg7[%c0_80, %c0_81] : memref<8x128xf32, #tpu.memory_space<vmem>>, vector<8x128xf32>
    tpu.vector_store %arg7[%c0_80, %c0_81], %181 {strides = array<i32>} : memref<8x128xf32, #tpu.memory_space<vmem>>, vector<8x128xf32>,
    return
  }
  func.func @transform_0(%arg0: i32) -> (i32, i32, i32) {
    %c0_i32 = arith.constant 0 : i32
    %c0_i32_0 = arith.constant 0 : i32
    %c0_i32_1 = arith.constant 0 : i32
    return %c0_i32, %arg0, %c0_i32_0 : i32, i32, i32
  }
  func.func @transform_1(%arg0: i32) -> (i32, i32, i32) {
    %c0_i32 = arith.constant 0 : i32
    %c0_i32_0 = arith.constant 0 : i32
    %c0_i32_1 = arith.constant 0 : i32
    %c0_i32_2 = arith.constant 0 : i32
    return %c0_i32, %c0_i32_0, %c0_i32_1 : i32, i32, i32
  }
  func.func @transform_2(%arg0: i32) -> (i32, i32, i32) {
    %c0_i32 = arith.constant 0 : i32
    %c0_i32_0 = arith.constant 0 : i32
    %c0_i32_1 = arith.constant 0 : i32
    %c0_i32_2 = arith.constant 0 : i32
    return %c0_i32, %c0_i32_0, %c0_i32_1 : i32, i32, i32
  }
  func.func @transform_3(%arg0: i32) -> (i32, i32, i32, i32) {
    %c0_i32 = arith.constant 0 : i32
    %c0_i32_0 = arith.constant 0 : i32
    %c0_i32_1 = arith.constant 0 : i32
    %c0_i32_2 = arith.constant 0 : i32
    %c0_i32_3 = arith.constant 0 : i32
    return %c0_i32, %c0_i32_0, %c0_i32_1, %c0_i32_2 : i32, i32, i32, i32
  }
  func.func @transform_4(%arg0: i32) -> (i32, i32, i32) {
    %c0_i32 = arith.constant 0 : i32
    %c0_i32_0 = arith.constant 0 : i32
    %c0_i32_1 = arith.constant 0 : i32
    %c0_i32_2 = arith.constant 0 : i32
    return %c0_i32, %c0_i32_0, %c0_i32_1 : i32, i32, i32
  }
  func.func @transform_5(%arg0: i32) -> (i32, i32) {
    %c0_i32 = arith.constant 0 : i32
    %c0_i32_0 = arith.constant 0 : i32
    %c0_i32_1 = arith.constant 0 : i32
    return %c0_i32, %c0_i32_0 : i32, i32
  }
  func.func @transform_6(%arg0: i32) -> (i32, i32) {
    %c0_i32 = arith.constant 0 : i32
    %c0_i32_0 = arith.constant 0 : i32
    return %arg0, %c0_i32 : i32, i32
  }
}

</mosaic_0001>

<bundles_post_ra>
// kernel: tpu_custom_call.1
= control target key start
LH: loop header
LB: loop body
LE: loop exit
PB: predicated region body
PF: predicated region fallthrough
CT: control target
= control target key end

     0   :  { %11 = vsyncpa [#allocation3], 0  ;;  %s2294_s0 = inlined_call_operand.vmem [shape: f32[2,8,128], index: 0, kind: input, shape index: {}]   ;;  %s2295_s1 = inlined_call_operand.vmem [shape: f32[2,6,128], index: 1, kind: input, shape index: {}]   ;;  %s2296_s2 = inlined_call_operand.hbm [shape: f32[2,128,128], index: 2, kind: input, shape index: {}]   ;;  %s2297_s3 = inlined_call_operand.hbm [shape: f32[2,3,128,128], index: 3, kind: input, shape index: {}]   ;;  %s2298_s4 = inlined_call_operand.hbm [shape: f32[2,128,128], index: 4, kind: input, shape index: {}]   ;;  %s2299_s5 = inlined_call_operand.vmem [shape: f32[1,128], index: 5, kind: input, shape index: {}]   ;;  %s2300_s6 = inlined_call_operand.hbm [shape: f32[8,128], index: 6, kind: output, shape index: {}]  }
   0x1   :  { %12 = vsyncpa [#allocation6], 0 }
   0x2   :  { %13 = vsyncpa [#allocation4], 0  ;;  %s2001_s21 = smov [#allocation5]   ;;  %s2002_s23 = smov [#allocation2]  }
   0x3   :  { %s35_s22 = sshll.u32 %s2001_s21, 4  ;;  %s23_s24 = sshll.u32 %s2002_s23, 4  ;;  %s36_s22 = int_to_ptr.vmem [resolvable:$true] %s35_s22  ;;  %s2045_s24 = int_to_ptr.vmem [resolvable:$true] %s23_s24 }
   0x4   :  { %s1907_s27 = scalar_lea.hbm %s2297_s3, 12288 }
   0x5   :  { %p1908_p0 = scmp.ne.s32.totalorder %s2297_s3, %s1907_s27  ;;  %p1911_p1 = scmp.lt.u32.totalorder %s1907_s27, %s2297_s3 }
   0x7   :  { %p1913_p2 = pnand %p1911_p1, %p1908_p0 }
   0x9   :  { %1916 = shalt.err (!%p1913_p2)
}
   0xa   :  { %s1917_s8 = scalar_lea.vmem %s36_s22, 12288  ;;  %p1922_p4 = scmp.lt.s32.totalorder %s36_s22, %s36_s22 }
   0xb   :  { %p1918_p3 = scmp.ne.s32.totalorder %s36_s22, %s1917_s8  ;;  %p1923_p5 = scmp.lt.s32.totalorder %s1917_s8, %s1917_s8 }
   0xd   :  { %p1924_p6 = por %p1923_p5, %p1922_p4 }
   0xf   :  { %p1925_p7 = pnand %p1924_p6, %p1918_p3 }
  0x11   :  { %1928 = shalt.err (!%p1925_p7)
}
  0x12   :  { %s2003_s9 = smov 128   ;;  %s2004_s10 = smov 8  }
  0x13   :  { %41 = dma.hbm_to_vmem [thread:$0]  %s2297_s3, 12288, %s36_s22, [#allocation6], %s2003_s9, %s2003_s9, %s2004_s10  }
  0x14   :  { %s1929_s15 = scalar_lea.hbm %s2296_s2, 4096 }
  0x15   :  { %p1930_p8 = scmp.ne.s32.totalorder %s2296_s2, %s1929_s15  ;;  %p1933_p9 = scmp.lt.u32.totalorder %s1929_s15, %s2296_s2 }
  0x17   :  { %p1935_p10 = pnand %p1933_p9, %p1930_p8 }
  0x19   :  { %1938 = shalt.err (!%p1935_p10)
}
  0x1a   :  { %s1939_s20 = scalar_lea.vmem %s2045_s24, 4096  ;;  %p1944_p12 = scmp.lt.s32.totalorder %s2045_s24, %s2045_s24 }
  0x1b   :  { %p1940_p11 = scmp.ne.s32.totalorder %s2045_s24, %s1939_s20  ;;  %p1945_p13 = scmp.lt.s32.totalorder %s1939_s20, %s1939_s20 }
  0x1d   :  { %p1946_p0 = por %p1945_p13, %p1944_p12 }
  0x1f   :  { %p1947_p1 = pnand %p1946_p0, %p1940_p11 }
  0x21   :  { %1950 = shalt.err (!%p1947_p1)
}
  0x22   :  { %29 = dma.hbm_to_vmem [thread:$0]  %s2296_s2, 4096, %s2045_s24, [#allocation3], %s2003_s9, %s2003_s9, %s2004_s10  }
  0x23   :  { %s2005_s22 = smov [#allocation7]   ;;  %s1951_s27 = scalar_lea.hbm %s2298_s4, 4096 }
  0x24   :  { %s47_s23 = sshll.u32 %s2005_s22, 4  ;;  %p1952_p2 = scmp.ne.s32.totalorder %s2298_s4, %s1951_s27  ;;  %s48_s23 = int_to_ptr.vmem [resolvable:$true] %s47_s23 }
  0x25   :  { %p1955_p3 = scmp.lt.u32.totalorder %s1951_s27, %s2298_s4 }
  0x27   :  { %p1957_p4 = pnand %p1955_p3, %p1952_p2 }
  0x29   :  { %1960 = shalt.err (!%p1957_p4)
}
  0x2a   :  { %s1961_s8 = scalar_lea.vmem %s48_s23, 4096  ;;  %p1966_p6 = scmp.lt.s32.totalorder %s48_s23, %s48_s23 }
  0x2b   :  { %p1962_p5 = scmp.ne.s32.totalorder %s48_s23, %s1961_s8  ;;  %p1967_p7 = scmp.lt.s32.totalorder %s1961_s8, %s1961_s8 }
  0x2d   :  { %p1968_p8 = por %p1967_p7, %p1966_p6 }
  0x2f   :  { %p1969_p9 = pnand %p1968_p8, %p1962_p5 }
  0x31   :  { %1972 = shalt.err (!%p1969_p9)
}
  0x32   :  { %53 = dma.hbm_to_vmem [thread:$0]  %s2298_s4, 4096, %s48_s23, [#allocation6], %s2003_s9, %s2003_s9, %s2004_s10  }
  0x33   :  { %1995 = dma.done.wait [#allocation3], 4096  }
  0x34   :  { %1996 = vsyncadd [#allocation3], 4294963200 }
  0x35   :  { %1997 = dma.done.wait [#allocation6], 16384  }
  0x36   :  { %1998 = vsyncadd [#allocation6], 4294950912  ;;  %v2006_v0 = vmov 0.0|0.0   ;;  %vm2007_vm0 = vmmov 0   ;;  %v2008_v1 = vmov 0.0   ;;  %v79_v2 = vld [vmem:[#allocation2] sm:$0xff]  ;;  %v65_v27 = vlaneseq }
  0x37   :  { %1631 = vmatprep.subr.bf16.mxu1 %v2006_v0  ;;  %1313 = vmatprep.mubr.msk.f32.mxu1 %vm2007_vm0, %v2008_v1  ;;  %v80_v3 = vld [vmem:[#allocation2 + $0x8] sm:$0xff]  ;;  %v81_v4 = vld [vmem:[#allocation2 + $0x10] sm:$0xff]  ;;  %v82_v6 = vld [vmem:[#allocation2 + $0x18] sm:$0xff]  ;;  %s2009_s16 = smov [#allocation8]  }
  0x38   :  { %1679 = vmatprep.subr.bf16.mxu0 %v2006_v0  ;;  %1383 = vmatprep.mubr.msk.f32.mxu0 %vm2007_vm0, %v2008_v1  ;;  %v1632_v5 = vpack.c.bf16 %v80_v3, %v79_v2  ;;  %v1635_v7 = vpack.c.bf16 %v82_v6, %v81_v4  ;;  %v83_v8 = vld [vmem:[#allocation2 + $0x20] sm:$0xff]  ;;  %v84_v9 = vld [vmem:[#allocation2 + $0x28] sm:$0xff]  ;;  %v85_v11 = vld [vmem:[#allocation2 + $0x30] sm:$0xff]  ;;  %v2116_v28 = vshrl.u32 %v65_v27, 7  ;;  %v66_v49 = vand.u32 127, %v65_v27  ;;  %s1093_s17 = sshll.u32 %s2009_s16, 4  ;;  %s1094_s17 = int_to_ptr.vmem [resolvable:$true] %s1093_s17 }
  0x39   :  { %v1638_v10 = vpack.c.bf16 %v84_v9, %v83_v8  ;;  %v86_v12 = vld [vmem:[#allocation2 + $0x38] sm:$0xff]  ;;  %v87_v14 = vld [vmem:[#allocation2 + $0x40] sm:$0xff]  ;;  %v88_v15 = vld [vmem:[#allocation2 + $0x48] sm:$0xff]  ;;  %s1973_s18 = scalar_lea.vmem %s1094_s17, 128  ;;  %p1978_p11 = scmp.lt.s32.totalorder %s1094_s17, %s1094_s17 }
  0x3a   :  { %1633 = vmatpush3.bf16.msra.mxu1 %v1632_v5  ;;  %v1641_v13 = vpack.c.bf16 %v86_v12, %v85_v11  ;;  %v1644_v16 = vpack.c.bf16 %v88_v15, %v87_v14  ;;  %v89_v17 = vld [vmem:[#allocation2 + $0x50] sm:$0xff]  ;;  %v90_v18 = vld [vmem:[#allocation2 + $0x58] sm:$0xff]  ;;  %v91_v20 = vld [vmem:[#allocation2 + $0x60] sm:$0xff]  ;;  %v97_v29 = vsub.s32 0, %v2116_v28  ;;  %vm67_vm1 = vcmp.lt.s32.totalorder %v66_v49, 32  ;;  %p1974_p10 = scmp.ne.s32.totalorder %s1094_s17, %s1973_s18  ;;  %p1979_p12 = scmp.lt.s32.totalorder %s1973_s18, %s1973_s18 }
  0x3b   :  { %1634 = vmatprep.subr.bf16.mxu1 %v2006_v0  ;;  %v1647_v19 = vpack.c.bf16 %v90_v18, %v89_v17  ;;  %v92_v21 = vld [vmem:[#allocation2 + $0x68] sm:$0xff]  ;;  %v93_v23 = vld [vmem:[#allocation2 + $0x70] sm:$0xff]  ;;  %v94_v24 = vld [vmem:[#allocation2 + $0x78] sm:$0xff]  ;;  %v2134_v52 = vsel %vm67_vm1, 1.0, %v2008_v1  ;;  %v190_v15 = vsub.s32 2, %v2116_v28 }
  0x3c   :  { %v1650_v22 = vpack.c.bf16 %v92_v21, %v91_v20  ;;  %v1653_v25 = vpack.c.bf16 %v94_v24, %v93_v23  ;;  %v78_v26 = vld [vmem:[%s2294_s0] sm:$0xff]  ;;  %v199_v41 = vld [vmem:[#allocation5 + $0x8] sm:$0xff]  ;;  %v200_v42 = vld [vmem:[#allocation5 + $0x10] sm:$0xff]  ;;  %p1980_p13 = por %p1979_p12, %p1978_p11 }
  0x3d   :  { %v2122_v30 = vld [vmem:[%s2295_s1] sm:$0x3f]  ;;  %v201_v44 = vld [vmem:[#allocation5 + $0x18] sm:$0xff]  ;;  %v203_v47 = vld [vmem:[#allocation5 + $0x28] sm:$0xff] }
  0x3e   :  { %1636 = vmatpush3.bf16.msra.mxu1 %v1635_v7  ;;  %v98_v31 = vrot.slane %v2122_v30, %v97_v29  ;;  %v198_v40 = vld [vmem:[#allocation5] sm:$0xff]  ;;  %v1659_v45 = vpack.c.bf16 %v201_v44, %v200_v42  ;;  %v204_v56 = vld [vmem:[#allocation5 + $0x30] sm:$0xff]  ;;  %v205_v57 = vld [vmem:[#allocation5 + $0x38] sm:$0xff]  ;;  %v191_v17 = vrot.slane %v2122_v30, %v190_v15  ;;  %p1981_p0 = pnand %p1980_p13, %p1974_p10 }
  0x3f   :  { %1637 = vmatprep.subr.bf16.mxu1 %v2006_v0  ;;  %v1656_v43 = vpack.c.bf16 %v199_v41, %v198_v40  ;;  %v202_v46 = vld [vmem:[#allocation5 + $0x20] sm:$0xff]  ;;  %v1665_v58 = vpack.c.bf16 %v205_v57, %v204_v56  ;;  %v207_v60 = vld [vmem:[#allocation5 + $0x48] sm:$0xff]  ;;  %v208_v62 = vld [vmem:[#allocation5 + $0x50] sm:$0xff] }
  0x40   :  { %v1662_v48 = vpack.c.bf16 %v203_v47, %v202_v46  ;;  %v206_v59 = vld [vmem:[#allocation5 + $0x40] sm:$0xff]  ;;  %v209_v63 = vld [vmem:[#allocation5 + $0x58] sm:$0xff]  ;;  %v211_v4 = vld [vmem:[#allocation5 + $0x68] sm:$0xff] }
  0x41   :  { %v1668_v61 = vpack.c.bf16 %v207_v60, %v206_v59  ;;  %v1671_v2 = vpack.c.bf16 %v209_v63, %v208_v62  ;;  %v210_v3 = vld [vmem:[#allocation5 + $0x60] sm:$0xff]  ;;  %v212_v6 = vld [vmem:[#allocation5 + $0x70] sm:$0xff]  ;;  %v213_v7 = vld [vmem:[#allocation5 + $0x78] sm:$0xff] }
  0x42   :  { %1639 = vmatpush3.bf16.msra.mxu1 %v1638_v10  ;;  %v1674_v5 = vpack.c.bf16 %v211_v4, %v210_v3  ;;  %v1677_v8 = vpack.c.bf16 %v213_v7, %v212_v6  ;;  %v292_v9 = vld [vmem:[#allocation5 + $0x80] sm:$0xff]  ;;  %v293_v10 = vld [vmem:[#allocation5 + $0x88] sm:$0xff]  ;;  %v294_v23 = vld [vmem:[#allocation5 + $0x90] sm:$0xff] }
  0x43   :  { %1640 = vmatprep.subr.bf16.mxu1 %v2006_v0  ;;  %v1680_v11 = vpack.c.bf16 %v293_v10, %v292_v9  ;;  %v295_v24 = vld [vmem:[#allocation5 + $0x98] sm:$0xff]  ;;  %v297_v27 = vld [vmem:[#allocation5 + $0xa8] sm:$0xff]  ;;  %v304_v42 = vld [vmem:[#allocation5 + $0xe0] sm:$0xff] }
  0x44   :  { %v303_v40 = vld [vmem:[#allocation5 + $0xd8] sm:$0xff]  ;;  %v402_v59 = vld [vmem:[#allocation5 + $0x100] sm:$0xff]  ;;  %v403_v60 = vld [vmem:[#allocation5 + $0x108] sm:$0xff] }
  0x45   :  { %1681 = vmatpush3.bf16.msra.mxu0 %v1680_v11  ;;  %v307_v46 = vld [vmem:[#allocation5 + $0xf8] sm:$0xff]  ;;  %v1704_v62 = vpack.c.bf16 %v403_v60, %v402_v59  ;;  %v406_v3 = vld [vmem:[#allocation5 + $0x120] sm:$0xff]  ;;  %v407_v4 = vld [vmem:[#allocation5 + $0x128] sm:$0xff] }
  0x46   :  { %1642 = vmatpush3.bf16.msra.mxu1 %v1641_v13  ;;  %1682 = vmatprep.subr.bf16.mxu0 %v2006_v0  ;;  %v405_v63 = vld [vmem:[#allocation5 + $0x118] sm:$0xff]  ;;  %v408_v10 = vld [vmem:[#allocation5 + $0x130] sm:$0xff] }
  0x47   :  { %1643 = vmatprep.subr.bf16.mxu1 %v2006_v0  ;;  %v409_v11 = vld [vmem:[#allocation5 + $0x138] sm:$0xff] }
  0x4a   :  { %1645 = vmatpush3.bf16.msra.mxu1 %v1644_v16  ;;  %v195_v16 = vsub.s32 3, %v2116_v28 }
  0x4b   :  { %1646 = vmatprep.subr.bf16.mxu1 %v2006_v0 }
  0x4c   :  { %v196_v20 = vrot.slane %v2122_v30, %v195_v16 }
  0x4e   :  { %1648 = vmatpush3.bf16.msra.mxu1 %v1647_v19 }
  0x4f   :  { %1649 = vmatprep.subr.bf16.mxu1 %v2006_v0 }
  0x52   :  { %1651 = vmatpush3.bf16.msra.mxu1 %v1650_v22 }
  0x53   :  { %1652 = vmatprep.subr.bf16.mxu1 %v2006_v0 }
  0x56   :  { %1654 = vmatpush3.bf16.msra.mxu1 %v1653_v25  ;;  %v1683_v25 = vpack.c.bf16 %v295_v24, %v294_v23  ;;  %v416_v24 = vld [vmem:[#allocation5 + $0x170] sm:$0xff] }
  0x57   :  { %1655 = vmatprep.subr.bf16.mxu1 %v2006_v0 }
  0x58   :  { %1684 = vmatpush3.bf16.msra.mxu0 %v1683_v25  ;;  %v417_v25 = vld [vmem:[#allocation5 + $0x178] sm:$0xff] }
  0x59   :  { %1314 = vmatmul.mubr.f32.vlgmr.msra.gmra.mrb[0].mxu1 %v78_v26  ;;  %1685 = vmatprep.subr.bf16.mxu0 %v2006_v0  ;;  %v296_v26 = vld [vmem:[#allocation5 + $0xa0] sm:$0xff] }
  0x5a   :  { %1348 = vmatprep.mubr.msk.f32.mxu1 %vm2007_vm0, %v2008_v1  ;;  %1657 = vmatpush3.bf16.msra.mxu1 %v1656_v43  ;;  %v305_v43 = vld [vmem:[#allocation5 + $0xe8] sm:$0xff] }
  0x5b   :  { %1658 = vmatprep.subr.bf16.mxu1 %v2006_v0  ;;  %v1698_v44 = vpack.c.bf16 %v305_v43, %v304_v42  ;;  %v500_v43 = vld [vmem:[#allocation7 + $0x40] sm:$0xff] }
  0x5e   :  { %1660 = vmatpush3.bf16.msra.mxu1 %v1659_v45  ;;  %v306_v45 = vld [vmem:[#allocation5 + $0xf0] sm:$0xff] }
  0x5f   :  { %1661 = vmatprep.subr.bf16.mxu1 %v2006_v0  ;;  %v1701_v47 = vpack.c.bf16 %v307_v46, %v306_v45  ;;  %v502_v46 = vld [vmem:[#allocation7 + $0x50] sm:$0xff] }
  0x62   :  { %1663 = vmatpush3.bf16.msra.mxu1 %v1662_v48 }
  0x63   :  { %1664 = vmatprep.subr.bf16.mxu1 %v2006_v0 }
  0x66   :  { %1666 = vmatpush3.bf16.msra.mxu1 %v1665_v58 }
  0x67   :  { %1667 = vmatprep.subr.bf16.mxu1 %v2006_v0 }
  0x6a   :  { %1669 = vmatpush3.bf16.msra.mxu1 %v1668_v61  ;;  %v404_v61 = vld [vmem:[#allocation5 + $0x110] sm:$0xff] }
  0x6b   :  { %1670 = vmatprep.subr.bf16.mxu1 %v2006_v0 }
  0x6e   :  { %1672 = vmatpush3.bf16.msra.mxu1 %v1671_v2  ;;  %v1707_v2 = vpack.c.bf16 %v405_v63, %v404_v61  ;;  %v585_v63 = vld [vmem:[#allocation2 + $0x88] sm:$0xff] }
  0x6f   :  { %1673 = vmatprep.subr.bf16.mxu1 %v2006_v0 }
  0x72   :  { %1675 = vmatpush3.bf16.msra.mxu1 %v1674_v5  ;;  %v1710_v5 = vpack.c.bf16 %v407_v4, %v406_v3 }
  0x73   :  { %1676 = vmatprep.subr.bf16.mxu1 %v2006_v0 }
  0x76   :  { %1678 = vmatpush3.bf16.msra.mxu1 %v1677_v8 }
  0x77   :  { %1703 = vmatprep.subr.bf16.mxu1 %v2006_v0 }
 0x12c   :  { %v165_v32 = vpop.f32.mrb[0].mxu1 }
 0x12d   :  { %v166_v33 = vadd.f32 %v165_v32, %v98_v31  ;;  %v1315_v34 = vpop.f32.mrb[1].mxu1  ;;  %v1686_v31 = vpack.c.bf16 %v297_v27, %v296_v26  ;;  %v298_v32 = vld [vmem:[#allocation5 + $0xb0] sm:$0xff]  ;;  %v1725_v26 = vpack.c.bf16 %v417_v25, %v416_v24  ;;  %v492_v27 = vld [vmem:[#allocation7] sm:$0xff]  ;;  %v599_v25 = vld [vmem:[#allocation2 + $0xf8] sm:$0xff] }
 0x12e   :  { %v598_v24 = vld [vmem:[#allocation2 + $0xf0] sm:$0xff] }
 0x12f   :  { %v1105_v35 = vmul.f32 -1.442695, %v166_v33  ;;  %1687 = vmatpush3.bf16.msra.mxu0 %v1686_v31  ;;  %v493_v31 = vld [vmem:[#allocation7 + $0x8] sm:$0xff] }
 0x130   :  { %1688 = vmatprep.subr.bf16.mxu0 %v2006_v0 }
 0x131   :  { %1883 = vpow2.f32 %v1105_v35  ;;  %v300_v35 = vld [vmem:[#allocation5 + $0xc0] sm:$0xff] }
 0x13b   :  { %v1884_v36 = vpop.eup %1883 }
 0x13c   :  { %v172_v37 = vadd.f32 1.0, %v1884_v36  ;;  %v301_v36 = vld [vmem:[#allocation5 + $0xc8] sm:$0xff] }
 0x13e   :  { %1885 = vrcp.f32 %v172_v37  ;;  %v1692_v37 = vpack.c.bf16 %v301_v36, %v300_v35  ;;  %v496_v36 = vld [vmem:[#allocation7 + $0x20] sm:$0xff] }
 0x148   :  { %v1886_v38 = vpop.eup %1885 }
 0x149   :  { %v2127_v39 = vmul.f32 %v1886_v38, %v166_v33  ;;  %v299_v33 = vld [vmem:[#allocation5 + $0xb8] sm:$0xff]  ;;  %v302_v38 = vld [vmem:[#allocation5 + $0xd0] sm:$0xff] }
 0x14a   :  { %v1689_v34 = vpack.c.bf16 %v299_v33, %v298_v32  ;;  %v1695_v41 = vpack.c.bf16 %v303_v40, %v302_v38  ;;  %v494_v32 = vld [vmem:[#allocation7 + $0x10] sm:$0xff]  ;;  %v1728_v33 = vpack.c.bf16 %v493_v31, %v492_v27  ;;  %v1108_v27 = vld [vmem:[%s2294_s0 + $0x8] sm:$0xff] }
 0x14b   :  { %176 = vadd.xlane.f32.xlu0 %v2127_v39  ;;  %v498_v40 = vld [vmem:[#allocation7 + $0x30] sm:$0xff] }
 0x14c   :  { %1690 = vmatpush3.bf16.msra.mxu0 %v1689_v34  ;;  %v495_v34 = vld [vmem:[#allocation7 + $0x18] sm:$0xff]  ;;  %v506_v31 = vld [vmem:[#allocation7 + $0x70] sm:$0xff] }
 0x14d   :  { %1691 = vmatprep.subr.bf16.mxu0 %v2006_v0  ;;  %v1731_v35 = vpack.c.bf16 %v495_v34, %v494_v32  ;;  %v507_v32 = vld [vmem:[#allocation7 + $0x78] sm:$0xff]  ;;  %v420_v34 = vsub.s32 1, %v2116_v28 }
 0x150   :  { %1693 = vmatpush3.bf16.msra.mxu0 %v1692_v37  ;;  %v497_v37 = vld [vmem:[#allocation7 + $0x28] sm:$0xff] }
 0x151   :  { %1694 = vmatprep.subr.bf16.mxu0 %v2006_v0  ;;  %v1734_v38 = vpack.c.bf16 %v497_v37, %v496_v36 }
 0x154   :  { %1696 = vmatpush3.bf16.msra.mxu0 %v1695_v41  ;;  %v499_v41 = vld [vmem:[#allocation7 + $0x38] sm:$0xff] }
 0x155   :  { %1697 = vmatprep.subr.bf16.mxu0 %v2006_v0  ;;  %v1737_v42 = vpack.c.bf16 %v499_v41, %v498_v40  ;;  %v2218_v40 = vld [vmem:[%s2295_s1 + $0x8] sm:$0x3f] }
 0x156   :  { %v603_v41 = vrot.slane %v2218_v40, %v97_v29 }
 0x158   :  { %1699 = vmatpush3.bf16.msra.mxu0 %v1698_v44  ;;  %v501_v44 = vld [vmem:[#allocation7 + $0x48] sm:$0xff] }
 0x159   :  { %1700 = vmatprep.subr.bf16.mxu0 %v2006_v0  ;;  %v1740_v45 = vpack.c.bf16 %v501_v44, %v500_v43 }
 0x15c   :  { %1702 = vmatpush3.bf16.msra.mxu0 %v1701_v47  ;;  %v503_v47 = vld [vmem:[#allocation7 + $0x58] sm:$0xff] }
 0x15d   :  { %1727 = vmatprep.subr.bf16.mxu0 %v2006_v0 }
 0x1d8   :  { %v177_v50 = vpop.xlane.xlu0 %176 }
 0x1d9   :  { %v178_v51 = vmul.f32 0.03125, %v177_v50 }
 0x1db   :  { %v179_v53 = vsub.f32 %v2127_v39, %v178_v51 }
 0x1dd   :  { %v180_v54 = vmul.f32 %v2134_v52, %v179_v53 }
 0x1df   :  { %v181_v55 = vmul.f32 %v180_v54, %v180_v54 }
 0x1e1   :  { %182 = vadd.xlane.f32.xlu0 %v181_v55 }
 0x26e   :  { %v183_v12 = vpop.xlane.xlu0 %182 }
 0x26f   :  { %v184_v13 = vmul.f32 0.03125, %v183_v12  ;;  %v1713_v12 = vpack.c.bf16 %v409_v11, %v408_v10  ;;  %v590_v10 = vld [vmem:[#allocation2 + $0xb0] sm:$0xff]  ;;  %v591_v11 = vld [vmem:[#allocation2 + $0xb8] sm:$0xff] }
 0x271   :  { %v185_v14 = vadd.f32 1e-05, %v184_v13  ;;  %v410_v13 = vld [vmem:[#allocation5 + $0x140] sm:$0xff] }
 0x273   :  { %1887 = vrsqrt.f32 %v185_v14  ;;  %v411_v14 = vld [vmem:[#allocation5 + $0x148] sm:$0xff] }
 0x27d   :  { %v1888_v18 = vpop.eup %1887 }
 0x27e   :  { %v187_v19 = vmul.f32 %v1888_v18, %v180_v54  ;;  %v412_v18 = vld [vmem:[#allocation5 + $0x150] sm:$0xff] }
 0x280   :  { %v192_v21 = vmul.f32 %v191_v17, %v187_v19  ;;  %v1716_v17 = vpack.c.bf16 %v411_v14, %v410_v13  ;;  %v413_v19 = vld [vmem:[#allocation5 + $0x158] sm:$0xff]  ;;  %v592_v13 = vld [vmem:[#allocation2 + $0xc0] sm:$0xff]  ;;  %v593_v14 = vld [vmem:[#allocation2 + $0xc8] sm:$0xff] }
 0x282   :  { %v197_v22 = vadd.f32 %v196_v20, %v192_v21  ;;  %v1719_v20 = vpack.c.bf16 %v413_v19, %v412_v18  ;;  %v414_v21 = vld [vmem:[#allocation5 + $0x160] sm:$0xff]  ;;  %v594_v18 = vld [vmem:[#allocation2 + $0xd0] sm:$0xff]  ;;  %v595_v19 = vld [vmem:[#allocation2 + $0xd8] sm:$0xff] }
 0x284   :  { %1349 = vmatmul.mubr.f32.vlgmr.msra.gmra.mrb[2].mxu1 %v197_v22  ;;  %v415_v22 = vld [vmem:[#allocation5 + $0x168] sm:$0xff] }
 0x285   :  { %1418 = vmatprep.mubr.msk.f32.mxu1 %vm2007_vm0, %v2008_v1  ;;  %1705 = vmatpush3.bf16.msra.mxu1 %v1704_v62  ;;  %v1722_v23 = vpack.c.bf16 %v415_v22, %v414_v21  ;;  %v584_v62 = vld [vmem:[#allocation2 + $0x80] sm:$0xff]  ;;  %v597_v22 = vld [vmem:[#allocation2 + $0xe8] sm:$0xff] }
 0x286   :  { %1706 = vmatprep.subr.bf16.mxu1 %v2006_v0  ;;  %v1752_v3 = vpack.c.bf16 %v585_v63, %v584_v62  ;;  %v596_v21 = vld [vmem:[#allocation2 + $0xe0] sm:$0xff] }
 0x289   :  { %1708 = vmatpush3.bf16.msra.mxu1 %v1707_v2 }
 0x28a   :  { %1709 = vmatprep.subr.bf16.mxu1 %v2006_v0 }
 0x28d   :  { %1711 = vmatpush3.bf16.msra.mxu1 %v1710_v5  ;;  %v586_v5 = vld [vmem:[#allocation2 + $0x90] sm:$0xff] }
 0x28e   :  { %1712 = vmatprep.subr.bf16.mxu1 %v2006_v0 }
 0x291   :  { %1714 = vmatpush3.bf16.msra.mxu1 %v1713_v12  ;;  %v1761_v12 = vpack.c.bf16 %v591_v11, %v590_v10  ;;  %v716_v11 = vld [vmem:[#allocation5 + $0x1e0] sm:$0xff] }
 0x292   :  { %1715 = vmatprep.subr.bf16.mxu1 %v2006_v0 }
 0x295   :  { %1717 = vmatpush3.bf16.msra.mxu1 %v1716_v17  ;;  %v1764_v17 = vpack.c.bf16 %v593_v14, %v592_v13  ;;  %v718_v14 = vld [vmem:[#allocation5 + $0x1f0] sm:$0xff] }
 0x296   :  { %1718 = vmatprep.subr.bf16.mxu1 %v2006_v0 }
 0x299   :  { %1720 = vmatpush3.bf16.msra.mxu1 %v1719_v20  ;;  %v1767_v20 = vpack.c.bf16 %v595_v19, %v594_v18  ;;  %v798_v19 = vld [vmem:[#allocation5 + $0x200] sm:$0xff] }
 0x29a   :  { %1721 = vmatprep.subr.bf16.mxu1 %v2006_v0 }
 0x29d   :  { %1723 = vmatpush3.bf16.msra.mxu1 %v1722_v23  ;;  %v1770_v23 = vpack.c.bf16 %v597_v22, %v596_v21 }
 0x29e   :  { %1724 = vmatprep.subr.bf16.mxu1 %v2006_v0 }
 0x2a1   :  { %1726 = vmatpush3.bf16.msra.mxu1 %v1725_v26  ;;  %v1773_v26 = vpack.c.bf16 %v599_v25, %v598_v24  ;;  %v696_v25 = vrot.slane %v2218_v40, %v190_v15  ;;  %v803_v15 = vld [vmem:[#allocation5 + $0x228] sm:$0xff] }
 0x2a2   :  { %1751 = vmatprep.subr.bf16.mxu1 %v2006_v0 }
 0x357   :  { %v280_v48 = vpop.f32.mrb[2].mxu1 }
 0x358   :  { %v1106_v49 = vmul.f32 -1.442695, %v280_v48  ;;  %v1350_v50 = vpop.f32.mrb[3].mxu1 }
 0x359   :  { %v505_v50 = vld [vmem:[#allocation7 + $0x68] sm:$0xff] }
 0x35a   :  { %1889 = vpow2.f32 %v1106_v49  ;;  %v504_v49 = vld [vmem:[#allocation7 + $0x60] sm:$0xff] }
 0x364   :  { %v1890_v51 = vpop.eup %1889 }
 0x365   :  { %v287_v53 = vadd.f32 1.0, %v1890_v51  ;;  %v1746_v51 = vpack.c.bf16 %v505_v50, %v504_v49  ;;  %v704_v49 = vld [vmem:[#allocation5 + $0x180] sm:$0xff]  ;;  %v705_v50 = vld [vmem:[#allocation5 + $0x188] sm:$0xff] }
 0x367   :  { %1891 = vrcp.f32 %v287_v53 }
 0x371   :  { %v1892_v54 = vpop.eup %1891 }
 0x372   :  { %v290_v55 = vmul.f32 %v1892_v54, %v280_v48  ;;  %v1743_v48 = vpack.c.bf16 %v503_v47, %v502_v46 }
 0x374   :  { %1384 = vmatmul.mubr.f32.vlgmr.msra.gmra.mrb[0].mxu0 %v290_v55 }
 0x375   :  { %1453 = vmatprep.mubr.msk.f32.mxu0 %vm2007_vm0, %v2008_v1  ;;  %1729 = vmatpush3.bf16.msra.mxu0 %v1728_v33  ;;  %v1749_v33 = vpack.c.bf16 %v507_v32, %v506_v31  ;;  %v701_v31 = vrot.slane %v2218_v40, %v195_v16  ;;  %v805_v16 = vld [vmem:[#allocation5 + $0x238] sm:$0xff] }
 0x376   :  { %1730 = vmatprep.subr.bf16.mxu0 %v2006_v0 }
 0x379   :  { %1732 = vmatpush3.bf16.msra.mxu0 %v1731_v35  ;;  %v421_v35 = vrot.slane %v2122_v30, %v420_v34 }
 0x37a   :  { %1733 = vmatprep.subr.bf16.mxu0 %v2006_v0 }
 0x37d   :  { %1735 = vmatpush3.bf16.msra.mxu0 %v1734_v38 }
 0x37e   :  { %1736 = vmatprep.subr.bf16.mxu0 %v2006_v0 }
 0x381   :  { %1738 = vmatpush3.bf16.msra.mxu0 %v1737_v42 }
 0x382   :  { %1739 = vmatprep.subr.bf16.mxu0 %v2006_v0 }
 0x385   :  { %1741 = vmatpush3.bf16.msra.mxu0 %v1740_v45 }
 0x386   :  { %1742 = vmatprep.subr.bf16.mxu0 %v2006_v0 }
 0x389   :  { %1744 = vmatpush3.bf16.msra.mxu0 %v1743_v48 }
 0x38a   :  { %1745 = vmatprep.subr.bf16.mxu0 %v2006_v0 }
 0x38d   :  { %1747 = vmatpush3.bf16.msra.mxu0 %v1746_v51  ;;  %v706_v51 = vld [vmem:[#allocation5 + $0x190] sm:$0xff] }
 0x38e   :  { %1748 = vmatprep.subr.bf16.mxu0 %v2006_v0 }
 0x391   :  { %1750 = vmatpush3.bf16.msra.mxu0 %v1749_v33 }
 0x392   :  { %1775 = vmatprep.subr.bf16.mxu0 %v2006_v0 }
 0x447   :  { %v374_v56 = vpop.f32.mrb[0].mxu0 }
 0x448   :  { %v378_v57 = vadd.f32 %v374_v56, %v2127_v39  ;;  %v1385_v58 = vpop.f32.mrb[1].mxu0  ;;  %v393_v56 = vsub.s32 4, %v2116_v28 }
 0x44a   :  { %379 = vadd.xlane.f32.xlu1 %v378_v57  ;;  %v394_v58 = vrot.slane %v2122_v30, %v393_v56 }
 0x4d7   :  { %v380_v39 = vpop.xlane.xlu1 %379 }
 0x4d8   :  { %v381_v6 = vmul.f32 0.03125, %v380_v39  ;;  %v587_v39 = vld [vmem:[#allocation2 + $0x98] sm:$0xff] }
 0x4da   :  { %v382_v7 = vsub.f32 %v378_v57, %v381_v6  ;;  %v398_v57 = vsub.s32 5, %v2116_v28  ;;  %v1755_v6 = vpack.c.bf16 %v587_v39, %v586_v5  ;;  %v712_v39 = vld [vmem:[#allocation5 + $0x1c0] sm:$0xff] }
 0x4dc   :  { %v2168_v8 = vmul.f32 %v2134_v52, %v382_v7  ;;  %v399_v61 = vrot.slane %v2122_v30, %v398_v57  ;;  %v588_v7 = vld [vmem:[#allocation2 + $0xa0] sm:$0xff] }
 0x4de   :  { %v384_v9 = vmul.f32 %v2168_v8, %v2168_v8 }
 0x4e0   :  { %385 = vadd.xlane.f32.xlu1 %v384_v9 }
 0x56d   :  { %v386_v53 = vpop.xlane.xlu1 %385 }
 0x56e   :  { %v387_v54 = vmul.f32 0.03125, %v386_v53  ;;  %v1776_v53 = vpack.c.bf16 %v705_v50, %v704_v49  ;;  %v810_v50 = vld [vmem:[#allocation5 + $0x260] sm:$0xff] }
 0x570   :  { %v388_v55 = vadd.f32 1e-05, %v387_v54  ;;  %v707_v54 = vld [vmem:[#allocation5 + $0x198] sm:$0xff] }
 0x571   :  { %v1779_v29 = vpack.c.bf16 %v707_v54, %v706_v51  ;;  %v811_v51 = vld [vmem:[#allocation5 + $0x268] sm:$0xff]  ;;  %v812_v54 = vld [vmem:[#allocation5 + $0x270] sm:$0xff] }
 0x572   :  { %1893 = vrsqrt.f32 %v388_v55  ;;  %v708_v55 = vld [vmem:[#allocation5 + $0x1a0] sm:$0xff] }
 0x57c   :  { %v1894_v59 = vpop.eup %1893 }
 0x57d   :  { %v390_v60 = vmul.f32 %v1894_v59, %v2168_v8  ;;  %v589_v8 = vld [vmem:[#allocation2 + $0xa8] sm:$0xff] }
 0x57e   :  { %v1758_v9 = vpack.c.bf16 %v589_v8, %v588_v7  ;;  %v714_v8 = vld [vmem:[#allocation5 + $0x1d0] sm:$0xff] }
 0x57f   :  { %v395_v2 = vmul.f32 %v394_v58, %v390_v60  ;;  %v709_v58 = vld [vmem:[#allocation5 + $0x1a8] sm:$0xff] }
 0x580   :  { %v1782_v59 = vpack.c.bf16 %v709_v58, %v708_v55 }
 0x581   :  { %v400_v4 = vadd.f32 %v399_v61, %v395_v2 }
 0x583   :  { %1419 = vmatmul.mubr.f32.vlgmr.msra.gmra.mrb[4].mxu1 %v400_v4  ;;  %v711_v4 = vld [vmem:[#allocation5 + $0x1b8] sm:$0xff] }
 0x584   :  { %1753 = vmatpush3.bf16.msra.mxu1 %v1752_v3  ;;  %1488 = vmatprep.mubr.msk.f32.mxu1 %vm2007_vm0, %v2008_v1  ;;  %v710_v3 = vld [vmem:[#allocation5 + $0x1b0] sm:$0xff] }
 0x585   :  { %1754 = vmatprep.subr.bf16.mxu1 %v2006_v0  ;;  %v1785_v5 = vpack.c.bf16 %v711_v4, %v710_v3 }
 0x588   :  { %1756 = vmatpush3.bf16.msra.mxu1 %v1755_v6  ;;  %v713_v6 = vld [vmem:[#allocation5 + $0x1c8] sm:$0xff] }
 0x589   :  { %1757 = vmatprep.subr.bf16.mxu1 %v2006_v0  ;;  %v1788_v7 = vpack.c.bf16 %v713_v6, %v712_v39  ;;  %v908_v39 = vld [vmem:[#allocation5 + $0x280] sm:$0xff]  ;;  %v909_v6 = vld [vmem:[#allocation5 + $0x288] sm:$0xff] }
 0x58c   :  { %1759 = vmatpush3.bf16.msra.mxu1 %v1758_v9  ;;  %v715_v9 = vld [vmem:[#allocation5 + $0x1d8] sm:$0xff] }
 0x58d   :  { %1760 = vmatprep.subr.bf16.mxu1 %v2006_v0  ;;  %v1791_v10 = vpack.c.bf16 %v715_v9, %v714_v8  ;;  %v1824_v8 = vpack.c.bf16 %v909_v6, %v908_v39  ;;  %v911_v9 = vld [vmem:[#allocation5 + $0x298] sm:$0xff] }
 0x58e   :  { %v1014_v39 = vld [vmem:[#allocation7 + $0xf8] sm:$0xff] }
 0x590   :  { %1762 = vmatpush3.bf16.msra.mxu1 %v1761_v12  ;;  %v717_v12 = vld [vmem:[#allocation5 + $0x1e8] sm:$0xff] }
 0x591   :  { %1763 = vmatprep.subr.bf16.mxu1 %v2006_v0  ;;  %v1794_v13 = vpack.c.bf16 %v717_v12, %v716_v11  ;;  %v912_v11 = vld [vmem:[#allocation5 + $0x2a0] sm:$0xff]  ;;  %v913_v12 = vld [vmem:[#allocation5 + $0x2a8] sm:$0xff] }
 0x594   :  { %1765 = vmatpush3.bf16.msra.mxu1 %v1764_v17  ;;  %v719_v17 = vld [vmem:[#allocation5 + $0x1f8] sm:$0xff] }
 0x595   :  { %1766 = vmatprep.subr.bf16.mxu1 %v2006_v0  ;;  %v1797_v18 = vpack.c.bf16 %v719_v17, %v718_v14 }
 0x598   :  { %1768 = vmatpush3.bf16.msra.mxu1 %v1767_v20  ;;  %v799_v20 = vld [vmem:[#allocation5 + $0x208] sm:$0xff] }
 0x599   :  { %1769 = vmatprep.subr.bf16.mxu1 %v2006_v0  ;;  %v1800_v21 = vpack.c.bf16 %v799_v20, %v798_v19  ;;  %v914_v20 = vld [vmem:[#allocation5 + $0x2b0] sm:$0xff] }
 0x59c   :  { %1771 = vmatpush3.bf16.msra.mxu1 %v1770_v23 }
 0x59d   :  { %1772 = vmatprep.subr.bf16.mxu1 %v2006_v0 }
 0x5a0   :  { %1774 = vmatpush3.bf16.msra.mxu1 %v1773_v26 }
 0x5a1   :  { %1799 = vmatprep.subr.bf16.mxu1 %v2006_v0 }
 0x5a3   :  { %1489 = vmatmul.mubr.f32.vlgmr.msra.gmra.mrb[6].mxu1 %v1108_v27 }
 0x5a4   :  { %1558 = vmatprep.mubr.msk.f32.mxu1 %vm2007_vm0, %v2008_v1  ;;  %1801 = vmatpush3.bf16.msra.mxu1 %v1800_v21  ;;  %v915_v21 = vld [vmem:[#allocation5 + $0x2b8] sm:$0xff] }
 0x5a5   :  { %1802 = vmatprep.subr.bf16.mxu1 %v2006_v0 }
 0x656   :  { %v488_v36 = vpop.f32.mrb[4].mxu1 }
 0x657   :  { %v489_v37 = vadd.f32 %v488_v36, %v421_v35  ;;  %v1420_v38 = vpop.f32.mrb[5].mxu1  ;;  %v800_v35 = vld [vmem:[#allocation5 + $0x210] sm:$0xff]  ;;  %v801_v36 = vld [vmem:[#allocation5 + $0x218] sm:$0xff] }
 0x658   :  { %v802_v38 = vld [vmem:[#allocation5 + $0x220] sm:$0xff] }
 0x659   :  { %1454 = vmatmul.mubr.f32.vlgmr.msra.gmra.mrb[2].mxu0 %v489_v37  ;;  %v1803_v37 = vpack.c.bf16 %v801_v36, %v800_v35  ;;  %v922_v35 = vld [vmem:[#allocation5 + $0x2f0] sm:$0xff]  ;;  %v923_v36 = vld [vmem:[#allocation5 + $0x2f8] sm:$0xff] }
 0x65a   :  { %1523 = vmatprep.mubr.msk.f32.mxu0 %vm2007_vm0, %v2008_v1  ;;  %1777 = vmatpush3.bf16.msra.mxu0 %v1776_v53  ;;  %v1818_v53 = vpack.c.bf16 %v811_v51, %v810_v50  ;;  %v1001_v50 = vld [vmem:[#allocation7 + $0x90] sm:$0xff]  ;;  %v1002_v51 = vld [vmem:[#allocation7 + $0x98] sm:$0xff] }
 0x65b   :  { %1778 = vmatprep.subr.bf16.mxu0 %v2006_v0  ;;  %1804 = vmatpush3.bf16.msra.mxu1 %v1803_v37  ;;  %v1845_v37 = vpack.c.bf16 %v923_v36, %v922_v35 }
 0x65c   :  { %1805 = vmatprep.subr.bf16.mxu1 %v2006_v0 }
 0x65e   :  { %1780 = vmatpush3.bf16.msra.mxu0 %v1779_v29  ;;  %v813_v29 = vld [vmem:[#allocation5 + $0x278] sm:$0xff] }
 0x65f   :  { %1781 = vmatprep.subr.bf16.mxu0 %v2006_v0  ;;  %v1821_v55 = vpack.c.bf16 %v813_v29, %v812_v54  ;;  %v1004_v54 = vld [vmem:[#allocation7 + $0xa8] sm:$0xff] }
 0x662   :  { %1783 = vmatpush3.bf16.msra.mxu0 %v1782_v59 }
 0x663   :  { %1784 = vmatprep.subr.bf16.mxu0 %v2006_v0 }
 0x666   :  { %1786 = vmatpush3.bf16.msra.mxu0 %v1785_v5 }
 0x667   :  { %1787 = vmatprep.subr.bf16.mxu0 %v2006_v0 }
 0x66a   :  { %1789 = vmatpush3.bf16.msra.mxu0 %v1788_v7  ;;  %v910_v7 = vld [vmem:[#allocation5 + $0x290] sm:$0xff] }
 0x66b   :  { %1790 = vmatprep.subr.bf16.mxu0 %v2006_v0 }
 0x66e   :  { %1792 = vmatpush3.bf16.msra.mxu0 %v1791_v10  ;;  %v1827_v10 = vpack.c.bf16 %v911_v9, %v910_v7  ;;  %v927_v7 = vrot.slane %v2218_v40, %v420_v34 }
 0x66f   :  { %1793 = vmatprep.subr.bf16.mxu0 %v2006_v0 }
 0x672   :  { %1795 = vmatpush3.bf16.msra.mxu0 %v1794_v13  ;;  %v1830_v13 = vpack.c.bf16 %v913_v12, %v912_v11  ;;  %v1104_v11 = vld [vmem:[%s2299_s5] ss:$0 sm:$0xff] }
 0x673   :  { %1796 = vmatprep.subr.bf16.mxu0 %v2006_v0 }
 0x676   :  { %v670_v42 = vpop.f32.mrb[6].mxu1  ;;  %1798 = vmatpush3.bf16.msra.mxu0 %v1797_v18 }
 0x677   :  { %v671_v43 = vadd.f32 %v670_v42, %v603_v41  ;;  %v1490_v44 = vpop.f32.mrb[7].mxu1  ;;  %1823 = vmatprep.subr.bf16.mxu0 %v2006_v0  ;;  %v1806_v41 = vpack.c.bf16 %v803_v15, %v802_v38  ;;  %v804_v42 = vld [vmem:[#allocation5 + $0x230] sm:$0xff] }
 0x678   :  { %v806_v44 = vld [vmem:[#allocation5 + $0x240] sm:$0xff] }
 0x679   :  { %v1109_v30 = vmul.f32 -1.442695, %v671_v43  ;;  %1807 = vmatpush3.bf16.msra.mxu1 %v1806_v41 }
 0x67a   :  { %1808 = vmatprep.subr.bf16.mxu1 %v2006_v0 }
 0x67b   :  { %1895 = vpow2.f32 %v1109_v30  ;;  %v807_v30 = vld [vmem:[#allocation5 + $0x248] sm:$0xff] }
 0x685   :  { %v1896_v45 = vpop.eup %1895 }
 0x686   :  { %v677_v46 = vadd.f32 1.0, %v1896_v45  ;;  %v1812_v45 = vpack.c.bf16 %v807_v30, %v806_v44  ;;  %v905_v44 = vrot.slane %v2218_v40, %v398_v57  ;;  %v999_v30 = vld [vmem:[#allocation7 + $0x80] sm:$0xff]  ;;  %v1005_v57 = vld [vmem:[#allocation7 + $0xb0] sm:$0xff] }
 0x688   :  { %1897 = vrcp.f32 %v677_v46  ;;  %v808_v46 = vld [vmem:[#allocation5 + $0x250] sm:$0xff] }
 0x692   :  { %v1898_v47 = vpop.eup %1897 }
 0x693   :  { %v2223_v48 = vmul.f32 %v1898_v47, %v671_v43  ;;  %v1809_v43 = vpack.c.bf16 %v805_v16, %v804_v42  ;;  %v809_v47 = vld [vmem:[#allocation5 + $0x258] sm:$0xff]  ;;  %v900_v42 = vrot.slane %v2218_v40, %v393_v56  ;;  %v1003_v56 = vld [vmem:[#allocation7 + $0xa0] sm:$0xff] }
 0x694   :  { %v1815_v49 = vpack.c.bf16 %v809_v47, %v808_v46  ;;  %v1854_v29 = vpack.c.bf16 %v1004_v54, %v1003_v56 }
 0x695   :  { %681 = vadd.xlane.f32.xlu0 %v2223_v48  ;;  %1810 = vmatpush3.bf16.msra.mxu1 %v1809_v43 }
 0x696   :  { %1811 = vmatprep.subr.bf16.mxu1 %v2006_v0 }
 0x699   :  { %1813 = vmatpush3.bf16.msra.mxu1 %v1812_v45  ;;  %v1000_v45 = vld [vmem:[#allocation7 + $0x88] sm:$0xff] }
 0x69a   :  { %1814 = vmatprep.subr.bf16.mxu1 %v2006_v0  ;;  %v1848_v47 = vpack.c.bf16 %v1000_v45, %v999_v30 }
 0x69d   :  { %1816 = vmatpush3.bf16.msra.mxu1 %v1815_v49 }
 0x69e   :  { %1817 = vmatprep.subr.bf16.mxu1 %v2006_v0 }
 0x6a1   :  { %1819 = vmatpush3.bf16.msra.mxu1 %v1818_v53  ;;  %v1851_v53 = vpack.c.bf16 %v1002_v51, %v1001_v50 }
 0x6a2   :  { %1820 = vmatprep.subr.bf16.mxu1 %v2006_v0 }
 0x6a5   :  { %1822 = vmatpush3.bf16.msra.mxu1 %v1821_v55  ;;  %v1006_v55 = vld [vmem:[#allocation7 + $0xb8] sm:$0xff] }
 0x722   :  { %v682_v60 = vpop.xlane.xlu0 %681 }
 0x723   :  { %v683_v61 = vmul.f32 0.03125, %v682_v60 }
 0x725   :  { %v684_v62 = vsub.f32 %v2223_v48, %v683_v61 }
 0x727   :  { %v685_v63 = vmul.f32 %v2134_v52, %v684_v62 }
 0x729   :  { %v686_v2 = vmul.f32 %v685_v63, %v685_v63 }
 0x72b   :  { %687 = vadd.xlane.f32.xlu1 %v686_v2 }
 0x7b8   :  { %v688_v22 = vpop.xlane.xlu1 %687 }
 0x7b9   :  { %v689_v23 = vmul.f32 0.03125, %v688_v22  ;;  %v1833_v22 = vpack.c.bf16 %v915_v21, %v914_v20 }
 0x7bb   :  { %v690_v24 = vadd.f32 1e-05, %v689_v23  ;;  %v916_v23 = vld [vmem:[#allocation5 + $0x2c0] sm:$0xff] }
 0x7bd   :  { %1899 = vrsqrt.f32 %v690_v24  ;;  %v917_v24 = vld [vmem:[#allocation5 + $0x2c8] sm:$0xff] }
 0x7c7   :  { %v1900_v26 = vpop.eup %1899 }
 0x7c8   :  { %v692_v27 = vmul.f32 %v1900_v26, %v685_v63  ;;  %v918_v26 = vld [vmem:[#allocation5 + $0x2d0] sm:$0xff] }
 0x7ca   :  { %v697_v32 = vmul.f32 %v696_v25, %v692_v27  ;;  %v1836_v25 = vpack.c.bf16 %v917_v24, %v916_v23  ;;  %v919_v27 = vld [vmem:[#allocation5 + $0x2d8] sm:$0xff] }
 0x7cc   :  { %v702_v33 = vadd.f32 %v701_v31, %v697_v32  ;;  %v1839_v31 = vpack.c.bf16 %v919_v27, %v918_v26  ;;  %v920_v32 = vld [vmem:[#allocation5 + $0x2e0] sm:$0xff] }
 0x7ce   :  { %1524 = vmatmul.mubr.f32.vlgmr.msra.gmra.mrb[4].mxu0 %v702_v33  ;;  %v921_v33 = vld [vmem:[#allocation5 + $0x2e8] sm:$0xff] }
 0x7cf   :  { %1593 = vmatprep.mubr.msk.f32.mxu0 %vm2007_vm0, %v2008_v1  ;;  %1825 = vmatpush3.bf16.msra.mxu0 %v1824_v8 }
 0x7d0   :  { %1826 = vmatprep.subr.bf16.mxu0 %v2006_v0 }
 0x7d3   :  { %1828 = vmatpush3.bf16.msra.mxu0 %v1827_v10 }
 0x7d4   :  { %1829 = vmatprep.subr.bf16.mxu0 %v2006_v0 }
 0x7d7   :  { %1831 = vmatpush3.bf16.msra.mxu0 %v1830_v13 }
 0x7d8   :  { %1832 = vmatprep.subr.bf16.mxu0 %v2006_v0 }
 0x7db   :  { %1834 = vmatpush3.bf16.msra.mxu0 %v1833_v22 }
 0x7dc   :  { %1835 = vmatprep.subr.bf16.mxu0 %v2006_v0 }
 0x7df   :  { %1837 = vmatpush3.bf16.msra.mxu0 %v1836_v25 }
 0x7e0   :  { %1838 = vmatprep.subr.bf16.mxu0 %v2006_v0 }
 0x7e3   :  { %1840 = vmatpush3.bf16.msra.mxu0 %v1839_v31 }
 0x7e4   :  { %1841 = vmatprep.subr.bf16.mxu0 %v2006_v0 }
 0x8a1   :  { %v786_v58 = vpop.f32.mrb[4].mxu0 }
 0x8a2   :  { %v1110_v59 = vmul.f32 -1.442695, %v786_v58  ;;  %v1525_v60 = vpop.f32.mrb[5].mxu0 }
 0x8a3   :  { %v1008_v60 = vld [vmem:[#allocation7 + $0xc8] sm:$0xff] }
 0x8a4   :  { %1901 = vpow2.f32 %v1110_v59  ;;  %v1007_v59 = vld [vmem:[#allocation7 + $0xc0] sm:$0xff] }
 0x8ae   :  { %v1902_v61 = vpop.eup %1901 }
 0x8af   :  { %v793_v62 = vadd.f32 1.0, %v1902_v61  ;;  %v1860_v61 = vpack.c.bf16 %v1008_v60, %v1007_v59 }
 0x8b1   :  { %1903 = vrcp.f32 %v793_v62  ;;  %v1010_v62 = vld [vmem:[#allocation7 + $0xd8] sm:$0xff] }
 0x8bb   :  { %v1904_v63 = vpop.eup %1903 }
 0x8bc   :  { %v796_v2 = vmul.f32 %v1904_v63, %v786_v58  ;;  %v1857_v58 = vpack.c.bf16 %v1006_v55, %v1005_v57 }
 0x8be   :  { %1559 = vmatmul.mubr.f32.vlgmr.msra.gmra.mrb[8].mxu1 %v796_v2  ;;  %v1011_v2 = vld [vmem:[#allocation7 + $0xe0] sm:$0xff] }
 0x991   :  { %v880_v3 = vpop.f32.mrb[8].mxu1 }
 0x992   :  { %v884_v4 = vadd.f32 %v880_v3, %v2223_v48  ;;  %v1560_v5 = vpop.f32.mrb[9].mxu1  ;;  %v1012_v3 = vld [vmem:[#allocation7 + $0xe8] sm:$0xff] }
 0x993   :  { %v1013_v5 = vld [vmem:[#allocation7 + $0xf0] sm:$0xff] }
 0x994   :  { %885 = vadd.xlane.f32.xlu0 %v884_v4  ;;  %v1869_v6 = vpack.c.bf16 %v1014_v39, %v1013_v5 }
 0xa21   :  { %v886_v48 = vpop.xlane.xlu0 %885 }
 0xa22   :  { %v887_v14 = vmul.f32 0.03125, %v886_v48 }
 0xa24   :  { %v888_v17 = vsub.f32 %v884_v4, %v887_v14  ;;  %v1866_v4 = vpack.c.bf16 %v1012_v3, %v1011_v2 }
 0xa26   :  { %v889_v18 = vmul.f32 %v2134_v52, %v888_v17  ;;  %v1842_v52 = vpack.c.bf16 %v921_v33, %v920_v32 }
 0xa28   :  { %v890_v19 = vmul.f32 %v889_v18, %v889_v18  ;;  %1843 = vmatpush3.bf16.msra.mxu0 %v1842_v52 }
 0xa29   :  { %1844 = vmatprep.subr.bf16.mxu0 %v2006_v0 }
 0xa2a   :  { %891 = vadd.xlane.f32.xlu1 %v890_v19 }
 0xa2c   :  { %1846 = vmatpush3.bf16.msra.mxu0 %v1845_v37 }
 0xa2d   :  { %1847 = vmatprep.subr.bf16.mxu0 %v2006_v0 }
 0xab7   :  { %v892_v38 = vpop.xlane.xlu1 %891 }
 0xab8   :  { %v893_v15 = vmul.f32 0.03125, %v892_v38 }
 0xaba   :  { %v894_v41 = vadd.f32 1e-05, %v893_v15 }
 0xabc   :  { %1905 = vrsqrt.f32 %v894_v41 }
 0xac6   :  { %v1906_v16 = vpop.eup %1905 }
 0xac7   :  { %v896_v43 = vmul.f32 %v1906_v16, %v889_v18 }
 0xac9   :  { %v901_v46 = vmul.f32 %v900_v42, %v896_v43 }
 0xacb   :  { %v906_v49 = vadd.f32 %v905_v44, %v901_v46 }
 0xacd   :  { %1594 = vmatmul.mubr.f32.vlgmr.msra.gmra.mrb[6].mxu0 %v906_v49 }
 0xace   :  { %1849 = vmatpush3.bf16.msra.mxu0 %v1848_v47  ;;  %1628 = vmatprep.mubr.msk.f32.mxu0 %vm2007_vm0, %v2008_v1  ;;  %v1009_v1 = vld [vmem:[#allocation7 + $0xd0] sm:$0xff] }
 0xacf   :  { %1850 = vmatprep.subr.bf16.mxu0 %v2006_v0  ;;  %v1863_v63 = vpack.c.bf16 %v1010_v62, %v1009_v1 }
 0xad2   :  { %1852 = vmatpush3.bf16.msra.mxu0 %v1851_v53 }
 0xad3   :  { %1853 = vmatprep.subr.bf16.mxu0 %v2006_v0 }
 0xad6   :  { %1855 = vmatpush3.bf16.msra.mxu0 %v1854_v29 }
 0xad7   :  { %1856 = vmatprep.subr.bf16.mxu0 %v2006_v0 }
 0xada   :  { %1858 = vmatpush3.bf16.msra.mxu0 %v1857_v58 }
 0xadb   :  { %1859 = vmatprep.subr.bf16.mxu0 %v2006_v0 }
 0xade   :  { %1861 = vmatpush3.bf16.msra.mxu0 %v1860_v61 }
 0xadf   :  { %1862 = vmatprep.subr.bf16.mxu0 %v2006_v0 }
 0xae2   :  { %1864 = vmatpush3.bf16.msra.mxu0 %v1863_v63 }
 0xae3   :  { %1865 = vmatprep.subr.bf16.mxu0 %v2006_v0 }
 0xae6   :  { %1867 = vmatpush3.bf16.msra.mxu0 %v1866_v4 }
 0xae7   :  { %1868 = vmatprep.subr.bf16.mxu0 %v2006_v0 }
 0xaea   :  { %1870 = vmatpush3.bf16.msra.mxu0 %v1869_v6 }
 0xba0   :  { %v994_v8 = vpop.f32.mrb[6].mxu0 }
 0xba1   :  { %v995_v9 = vadd.f32 %v994_v8, %v927_v7  ;;  %v1595_v10 = vpop.f32.mrb[7].mxu0 }
 0xba3   :  { %1629 = vmatmul.mubr.f32.vlgmr.msra.gmra.mrb[2].mxu0 %v995_v9 }
 0xc76   :  { %v1081_v12 = vpop.f32.mrb[2].mxu0 }
 0xc77   :  { %v1871_v0 = vadd.f32 %v1104_v11, %v1081_v12  ;;  %v1630_v13 = vpop.f32.mrb[3].mxu0 }
 0xc79   :  { %1086 = vst [vmem:[#allocation8] sm:$0xff] %v1871_v0 }
 0xc7a   :  { %1984 = shalt.err (!%p1981_p0)
}
 0xc7b   :  { %s1985_s3 = scalar_lea.hbm %s2300_s6, 128 }
 0xc7c   :  { %p1986_p1 = scmp.ne.s32.totalorder %s2300_s6, %s1985_s3  ;;  %p1989_p2 = scmp.lt.u32.totalorder %s1985_s3, %s2300_s6 }
 0xc7e   :  { %p1991_p3 = pnand %p1989_p2, %p1986_p1 }
 0xc80   :  { %1994 = shalt.err (!%p1991_p3)
}
 0xc81   :  { %1096 = dma.vmem_to_hbm [thread:$0]  %s1094_s17, 128, %s2300_s6, [#allocation4]  }
 0xc82   :  { %1999 = dma.done.wait [#allocation4], 128  }
 0xc83   :  { %2000 = vsyncadd [#allocation4], 4294967168 }
 0xc84   :  { %1100 = vsyncpa [#allocation3], 1 }
 0xc85   :  { %1101 = vsyncpa [#allocation6], 1 }
 0xc86   :  { %1102 = vsyncpa [#allocation4], 1 }

</bundles_post_ra>
